<compile_context>
chip_gen: v7x
topology: tpu7x:2x2x1
jax: 0.10.0
libtpu: 0.0.40
codegen_flags: <defaults>
</compile_context>

<pallas_src>
import functools

import jax
import jax.numpy as jnp
from jax.experimental import pallas as pl
from jax.experimental.pallas import tpu as pltpu


def _layer_norm(x, gamma, beta, eps=1e-5):
    # One-pass LN: E[x] and E[x^2] from a single sweep over x, var = E[x^2]-mu^2.
    mu = jnp.mean(x, axis=-1, keepdims=True)
    ms = jnp.mean(x * x, axis=-1, keepdims=True)
    inv = jax.lax.rsqrt(ms - mu * mu + eps)
    return (x - mu) * inv * gamma + beta


def block_kernel(x_ref, wqkv_ref, g1_ref, be1_ref, g2_ref, be2_ref,
                 w1_ref, b1_ref, w2_ref, b2_ref, o_ref,
                 *, n_heads, bb, seq, compute_dtype):
    C = x_ref.shape[-1]
    hs = C // n_heads
    rows = bb * seq

    # Flatten (Bb, T, C) -> (Bb*T, C): LN / projection / FFN act on all rows at once.
    x = x_ref[...].reshape(rows, C).astype(jnp.float32)

    # ---- LayerNorm 1 (f32) ----
    x_ln1 = _layer_norm(x, g1_ref[0], be1_ref[0])

    # ---- Fused q/k/v projection: one wide (rows, C) @ (C, 3C) bf16 MXU matmul.
    #      Softmax scale is already folded into the q weight columns. ----
    qkv = jnp.dot(x_ln1.astype(compute_dtype), wqkv_ref[...],
                  preferred_element_type=jnp.float32)            # (rows, 3C) f32

    # Batched (over folded batch) 3-D views for attention.
    q = qkv[:, 0 * C:1 * C].reshape(bb, seq, C).astype(compute_dtype)
    k = qkv[:, 1 * C:2 * C].reshape(bb, seq, C).astype(compute_dtype)
    v = qkv[:, 2 * C:3 * C].reshape(bb, seq, C).astype(compute_dtype)

    # ---- Attention: small static head loop; batch handled by batched einsum.
    #      No scratch slab / masked stores: head outputs concatenated lane-dense. ----
    head_outs = []
    for h in range(n_heads):
        c0, c1 = h * hs, (h + 1) * hs
        s = jnp.einsum('bqd,bkd->bqk', q[:, :, c0:c1], k[:, :, c0:c1],
                       preferred_element_type=jnp.float32)       # (bb, T, T) f32
        s = s - jnp.max(s, axis=-1, keepdims=True)
        p = jnp.exp(s)
        # approx reciprocal -> EUP slot; rows sum to 1 within ~1e-3 rel (ok at 2e-2 tol)
        p = p * pl.reciprocal(jnp.sum(p, axis=-1, keepdims=True), approx=True)
        head_outs.append(
            jnp.einsum('bqk,bkd->bqd', p.astype(compute_dtype), v[:, :, c0:c1],
                       preferred_element_type=jnp.float32))      # (bb, T, hs) f32

    attn = jnp.concatenate(head_outs, axis=-1).reshape(rows, C)  # lane-dense (rows, C)

    # ---- Residual 1 ----
    x1 = attn + x

    # ---- LayerNorm 2 ----
    x_ln2 = _layer_norm(x1, g2_ref[0], be2_ref[0])

    # ---- FeedForward: Linear(C,4C) -> ReLU -> Linear(4C,C) ----
    h1 = jnp.dot(x_ln2.astype(compute_dtype), w1_ref[...],
                 preferred_element_type=jnp.float32) + b1_ref[0]
    h1 = jnp.maximum(h1, 0.0)
    ffn = jnp.dot(h1.astype(compute_dtype), w2_ref[...],
                  preferred_element_type=jnp.float32) + b2_ref[0]

    # ---- Residual 2 ----
    o_ref[...] = (ffn + x1).reshape(bb, seq, C).astype(o_ref.dtype)


# ----------------------------- planning helpers -----------------------------

def _tpu_vmem_capacity():
    try:
        return int(pltpu.get_tpu_info().vmem_capacity_bytes)
    except Exception:
        return 128 * 1024 * 1024   # v5e/v6e physical; conservative default


def _vmem_bytes_estimate(bb, T, C, n_heads, double_buffer_consts=False):
    """Scoped-VMEM estimate for one grid step (before headroom)."""
    rows = bb * T
    H4 = 4 * C
    # double-buffered f32 x-input and output blocks
    io = 2 * (rows * C * 4) * 2
    # weights: bf16 qkv/w1/w2 + f32 LN params and biases (single-buffered by default)
    w = (3 * C * C + 2 * C * H4) * 2 + (6 * C + H4) * 4
    if double_buffer_consts:
        w *= 2
    # f32/bf16 activation working set: x, ln1, qkv(3C)+bf16, head outs, x1, ln2,
    # h1(4C)+bf16, ffn, slack -> ~18 rows*C f32-equivalents
    act = 18 * rows * C * 4
    # a couple of (bb,T,T) score matrices (f32 scores + bf16 probs) live at once
    scores = 2 * bb * T * T * 6
    return io + w + act + scores


def _pick_block_b(B, T, C, n_heads, vmem_cap, rows_target):
    """Largest divisor of B that (a) keeps >=2 grid steps (v7x 2-TC split +
    pipeline overlap), (b) fits the VMEM cap with 25% headroom, (c) stops once
    matmul M (= bb*T rows) reaches rows_target."""
    max_bb = max(1, B // 2)
    best = 1
    for d in range(1, max_bb + 1):
        if B % d:
            continue
        if int(1.25 * _vmem_bytes_estimate(d, T, C, n_heads)) > vmem_cap:
            break
        best = d
        if d * T >= rows_target:
            break
    return best


# ------------------------------- host wrappers -------------------------------

def prepare_params(params, compute_dtype=jnp.bfloat16):
    """One-time weight preprocessing (hoisted out of the forward path):
    fuse per-head q/k/v weights into one (C, 3C) bf16 matrix with the softmax
    scale folded into the q columns, and cast FFN weights to bf16."""
    n_heads, C, _ = params["wq"].shape
    scale = jnp.float32(C ** (-0.5))        # n_embd**-0.5, matching the PyTorch code
    to2d = lambda w: jnp.transpose(w, (1, 0, 2)).reshape(C, C)
    wqkv = jnp.concatenate(
        [to2d(params["wq"]) * scale,        # scale folded into q (zero runtime cost)
         to2d(params["wk"]),
         to2d(params["wv"])], axis=-1).astype(compute_dtype)
    return {
        "n_heads": int(n_heads),
        "wqkv": wqkv,
        "w1": params["w1"].astype(compute_dtype),
        "w2": params["w2"].astype(compute_dtype),
        "b1": params["b1"].astype(jnp.float32),
        "b2": params["b2"].astype(jnp.float32),
        "g1": params["g1"].astype(jnp.float32),
        "be1": params["be1"].astype(jnp.float32),
        "g2": params["g2"].astype(jnp.float32),
        "be2": params["be2"].astype(jnp.float32),
    }


def block_forward(x, prep, *, block_b=None):
    """x: (B, T, C) float32. prep: output of prepare_params."""
    B, T, C = x.shape
    n_heads = prep["n_heads"]
    H4 = 4 * C
    compute_dtype = prep["wqkv"].dtype

    # Generation-aware VMEM budget: ~54 MiB cap on v7x (64 MiB physical),
    # ~100 MiB on v5e/v6e (128 MiB physical).
    phys = _tpu_vmem_capacity()
    cap = min(int(phys * 0.85), 100 * 1024 * 1024)
    rows_target = 256 if phys <= 80 * 1024 * 1024 else 512

    if block_b is None:
        block_b = _pick_block_b(B, T, C, n_heads, cap, rows_target)
    assert B % block_b == 0

    kernel = functools.partial(block_kernel, n_heads=n_heads, bb=block_b,
                               seq=T, compute_dtype=compute_dtype)

    def build(single_buffer_consts):
        def cspec(shape):
            idx = lambda i: (0,) * len(shape)
            if single_buffer_consts:
                # constant index_map -> double buffering buys nothing; save VMEM.
                return pl.BlockSpec(shape, idx, pipeline_mode=pl.Buffered(1))
            return pl.BlockSpec(shape, idx)

        est = _vmem_bytes_estimate(block_b, T, C, n_heads,
                                   double_buffer_consts=not single_buffer_consts)
        vmem_limit = int(min(cap, max(32 * 1024 * 1024, int(1.25 * est))))

        grid_spec = pltpu.PrefetchScalarGridSpec(
            num_scalar_prefetch=0,
            grid=(B // block_b,),
            in_specs=[
                pl.BlockSpec((block_b, T, C), lambda i: (i, 0, 0)),   # x
                cspec((C, 3 * C)),                                    # fused wqkv (bf16)
                cspec((1, C)), cspec((1, C)),                         # ln1 gamma / beta
                cspec((1, C)), cspec((1, C)),                         # ln2 gamma / beta
                cspec((C, H4)),                                       # ffn w1 (bf16)
                cspec((1, H4)),                                       # ffn b1
                cspec((H4, C)),                                       # ffn w2 (bf16)
                cspec((1, C)),                                        # ffn b2
            ],
            out_specs=pl.BlockSpec((block_b, T, C), lambda i: (i, 0, 0)),
        )
        return pl.pallas_call(
            kernel,
            out_shape=jax.ShapeDtypeStruct((B, T, C), x.dtype),
            grid_spec=grid_spec,
            compiler_params=pltpu.CompilerParams(
                dimension_semantics=("parallel",),   # batch axis -> 2-TC split on v7x
                vmem_limit_bytes=vmem_limit,
            ),
        )

    args = (x, prep["wqkv"],
            prep["g1"], prep["be1"], prep["g2"], prep["be2"],
            prep["w1"], prep["b1"], prep["w2"], prep["b2"])
    try:
        return build(True)(*args)        # single-buffered constants
    except Exception:
        return build(False)(*args)       # fallback: default (double-buffered) specs


# ------------------------------ reference & test ------------------------------

def init_params(key, n_heads, n_embd):
    head_size = n_embd // n_heads
    keys = jax.random.split(key, 8)
    scale = 0.02
    return {
        # per-head projections stored (n_heads, n_embd, head_size) so y = x @ W[h]
        "wq": scale * jax.random.normal(keys[0], (n_heads, n_embd, head_size), jnp.float32),
        "wk": scale * jax.random.normal(keys[1], (n_heads, n_embd, head_size), jnp.float32),
        "wv": scale * jax.random.normal(keys[2], (n_heads, n_embd, head_size), jnp.float32),
        "g1": jnp.ones((1, n_embd), jnp.float32),
        "be1": jnp.zeros((1, n_embd), jnp.float32),
        "g2": jnp.ones((1, n_embd), jnp.float32),
        "be2": jnp.zeros((1, n_embd), jnp.float32),
        "w1": scale * jax.random.normal(keys[3], (n_embd, 4 * n_embd), jnp.float32),
        "b1": scale * jax.random.normal(keys[4], (1, 4 * n_embd), jnp.float32),
        "w2": scale * jax.random.normal(keys[5], (4 * n_embd, n_embd), jnp.float32),
        "b2": scale * jax.random.normal(keys[6], (1, n_embd), jnp.float32),
    }


def block_reference(x, params):
    """Pure-JAX f32 reference mirroring the PyTorch forward semantics."""
    B, T, C = x.shape
    x_ln1 = _layer_norm(x, params["g1"][0], params["be1"][0])
    heads = []
    for h in range(params["wq"].shape[0]):
        q = x_ln1 @ params["wq"][h]
        k = x_ln1 @ params["wk"][h]
        v = x_ln1 @ params["wv"][h]
        wei = (q @ jnp.swapaxes(k, -2, -1)) * (C ** -0.5)
        wei = jax.nn.softmax(wei, axis=-1)
        heads.append(wei @ v)
    x1 = jnp.concatenate(heads, axis=-1) + x
    x_ln2 = _layer_norm(x1, params["g2"][0], params["be2"][0])
    h1 = jnp.maximum(x_ln2 @ params["w1"] + params["b1"][0], 0.0)
    return h1 @ params["w2"] + params["b2"][0] + x1


if __name__ == "__main__":
    B, T, n_embd, n_heads = 2, 8, 32, 4

    key = jax.random.PRNGKey(0)
    kx, kp = jax.random.split(key)
    x = jax.random.normal(kx, (B, T, n_embd), jnp.float32)
    params = init_params(kp, n_heads, n_embd)

    prep = prepare_params(params)     # one-time weight preprocessing (hoisted)
    out = jax.block_until_ready(block_forward(x, prep))
    ref = block_reference(x, params)

    assert out.shape == (B, T, n_embd)
    # bf16 MXU operands (f32 accumulate) + approx softmax reciprocal vs pure-f32
    # reference -> looser tolerance.
    max_diff = float(jnp.max(jnp.abs(out - ref)))
    assert jnp.allclose(out, ref, atol=2e-2, rtol=2e-2), f"mismatch vs reference: {max_diff}"

    print("KERNEL_OK")
</pallas_src>

<mosaic_0001>
module attributes {stable_mosaic.version = 11 : i64} {
  func.func @block_kernel(%arg0: i32, %arg1: memref<1x8x32xf32, #tpu.memory_space<vmem>>, %arg2: memref<32x96xbf16, #tpu.memory_space<vmem>>, %arg3: memref<1x32xf32, #tpu.memory_space<vmem>>, %arg4: memref<1x32xf32, #tpu.memory_space<vmem>>, %arg5: memref<1x32xf32, #tpu.memory_space<vmem>>, %arg6: memref<1x32xf32, #tpu.memory_space<vmem>>, %arg7: memref<32x128xbf16, #tpu.memory_space<vmem>>, %arg8: memref<1x128xf32, #tpu.memory_space<vmem>>, %arg9: memref<128x32xbf16, #tpu.memory_space<vmem>>, %arg10: memref<1x32xf32, #tpu.memory_space<vmem>>, %arg11: memref<1x8x32xf32, #tpu.memory_space<vmem>>) attributes {dimension_semantics = [#tpu.dimension_semantics<parallel>], iteration_bounds = array<i64: 2>, scalar_prefetch = 0 : i64, scratch_operands = 0 : i64, tpu.core_type = #tpu.core_type<tc>, window_params = [{transform_indices = @transform_0, window_bounds = array<i64: 1, 8, 32>}, {pipeline_mode = #tpu.pipeline_mode<synchronous>, transform_indices = @transform_1, window_bounds = array<i64: 32, 96>}, {pipeline_mode = #tpu.pipeline_mode<synchronous>, transform_indices = @transform_2, window_bounds = array<i64: 1, 32>}, {pipeline_mode = #tpu.pipeline_mode<synchronous>, transform_indices = @transform_3, window_bounds = array<i64: 1, 32>}, {pipeline_mode = #tpu.pipeline_mode<synchronous>, transform_indices = @transform_4, window_bounds = array<i64: 1, 32>}, {pipeline_mode = #tpu.pipeline_mode<synchronous>, transform_indices = @transform_5, window_bounds = array<i64: 1, 32>}, {pipeline_mode = #tpu.pipeline_mode<synchronous>, transform_indices = @transform_6, window_bounds = array<i64: 32, 128>}, {pipeline_mode = #tpu.pipeline_mode<synchronous>, transform_indices = @transform_7, window_bounds = array<i64: 1, 128>}, {pipeline_mode = #tpu.pipeline_mode<synchronous>, transform_indices = @transform_8, window_bounds = array<i64: 128, 32>}, {pipeline_mode = #tpu.pipeline_mode<synchronous>, transform_indices = @transform_9, window_bounds = array<i64: 1, 32>}, {transform_indices = @transform_10, window_bounds = array<i64: 1, 8, 32>}]} {
    %c0 = arith.constant 0 : index
    %c0_0 = arith.constant 0 : index
    %c0_1 = arith.constant 0 : index
    %0 = vector.load %arg1[%c0, %c0_0, %c0_1] : memref<1x8x32xf32, #tpu.memory_space<vmem>>, vector<1x8x32xf32>
    %1 = vector.shape_cast %0 : vector<1x8x32xf32> to vector<8x32xf32>
    %c0_2 = arith.constant 0 : index
    %c0_3 = arith.constant 0 : index
    %2 = vector.load %arg3[%c0_2, %c0_3] : memref<1x32xf32, #tpu.memory_space<vmem>>, vector<1x32xf32>
    %3 = vector.shape_cast %2 : vector<1x32xf32> to vector<32xf32>
    %c0_4 = arith.constant 0 : index
    %c0_5 = arith.constant 0 : index
    %4 = vector.load %arg4[%c0_4, %c0_5] : memref<1x32xf32, #tpu.memory_space<vmem>>, vector<1x32xf32>
    %5 = vector.shape_cast %4 : vector<1x32xf32> to vector<32xf32>
    %cst = arith.constant dense<0.000000e+00> : vector<8xf32>
    %6 = vector.multi_reduction <add>, %1, %cst [1] : vector<8x32xf32> to vector<8xf32>
    %7 = vector.shape_cast %6 : vector<8xf32> to vector<8x1xf32>
    %cst_6 = arith.constant 3.200000e+01 : f32
    %8 = vector.broadcast %cst_6 : f32 to vector<8x1xf32>
    %9 = arith.divf %7, %8 : vector<8x1xf32>
    %10 = arith.mulf %1, %1 : vector<8x32xf32>
    %cst_7 = arith.constant dense<0.000000e+00> : vector<8xf32>
    %11 = vector.multi_reduction <add>, %10, %cst_7 [1] : vector<8x32xf32> to vector<8xf32>
    %12 = vector.shape_cast %11 : vector<8xf32> to vector<8x1xf32>
    %cst_8 = arith.constant 3.200000e+01 : f32
    %13 = vector.broadcast %cst_8 : f32 to vector<8x1xf32>
    %14 = arith.divf %12, %13 : vector<8x1xf32>
    %15 = arith.mulf %9, %9 : vector<8x1xf32>
    %16 = arith.subf %14, %15 : vector<8x1xf32>
    %cst_9 = arith.constant 9.99999974E-6 : f32
    %17 = vector.broadcast %cst_9 : f32 to vector<8x1xf32>
    %18 = arith.addf %16, %17 : vector<8x1xf32>
    %19 = math.rsqrt %18 : vector<8x1xf32>
    %20 = vector.broadcast %9 : vector<8x1xf32> to vector<8x32xf32>
    %21 = arith.subf %1, %20 : vector<8x32xf32>
    %22 = vector.broadcast %19 : vector<8x1xf32> to vector<8x32xf32>
    %23 = arith.mulf %21, %22 : vector<8x32xf32>
    %24 = vector.shape_cast %3 : vector<32xf32> to vector<1x32xf32>
    %25 = vector.broadcast %24 : vector<1x32xf32> to vector<8x32xf32>
    %26 = arith.mulf %23, %25 : vector<8x32xf32>
    %27 = vector.shape_cast %5 : vector<32xf32> to vector<1x32xf32>
    %28 = vector.broadcast %27 : vector<1x32xf32> to vector<8x32xf32>
    %29 = arith.addf %26, %28 : vector<8x32xf32>
    %30 = arith.truncf %29 : vector<8x32xf32> to vector<8x32xbf16>
    %c0_10 = arith.constant 0 : index
    %c0_11 = arith.constant 0 : index
    %31 = vector.load %arg2[%c0_10, %c0_11] : memref<32x96xbf16, #tpu.memory_space<vmem>>, vector<32x96xbf16>
    %cst_12 = arith.constant dense<0.000000e+00> : vector<8x96xf32>
    %32 = tpu.matmul %30, %31, %cst_12 {dimension_numbers = #tpu.dot_dimension_numbers<[1], [0], [0], [1], [0, 0, 1, 1], [], []>} : vector<8x32xbf16>, vector<32x96xbf16>, vector<8x96xf32> -> vector<8x96xf32>
    %33 = vector.extract_strided_slice %32 {offsets = [0, 0], sizes = [8, 32], strides = [1, 1]} : vector<8x96xf32> to vector<8x32xf32>
    %34 = vector.shape_cast %33 : vector<8x32xf32> to vector<1x8x32xf32>
    %35 = arith.truncf %34 : vector<1x8x32xf32> to vector<1x8x32xbf16>
    %36 = vector.extract_strided_slice %32 {offsets = [0, 32], sizes = [8, 32], strides = [1, 1]} : vector<8x96xf32> to vector<8x32xf32>
    %37 = vector.shape_cast %36 : vector<8x32xf32> to vector<1x8x32xf32>
    %38 = arith.truncf %37 : vector<1x8x32xf32> to vector<1x8x32xbf16>
    %39 = vector.extract_strided_slice %32 {offsets = [0, 64], sizes = [8, 32], strides = [1, 1]} : vector<8x96xf32> to vector<8x32xf32>
    %40 = vector.shape_cast %39 : vector<8x32xf32> to vector<1x8x32xf32>
    %41 = arith.truncf %40 : vector<1x8x32xf32> to vector<1x8x32xbf16>
    %42 = vector.extract_strided_slice %35 {offsets = [0, 0, 0], sizes = [1, 8, 8], strides = [1, 1, 1]} : vector<1x8x32xbf16> to vector<1x8x8xbf16>
    %43 = vector.extract_strided_slice %38 {offsets = [0, 0, 0], sizes = [1, 8, 8], strides = [1, 1, 1]} : vector<1x8x32xbf16> to vector<1x8x8xbf16>
    "tpu.trace_start"() <{level = 10 : i32, message = "bqd,bkd->bqk"}> : () -> ()
    %cst_13 = arith.constant dense<0.000000e+00> : vector<1x8x8xf32>
    %44 = tpu.matmul %42, %43, %cst_13 {dimension_numbers = #tpu.dot_dimension_numbers<[2], [2], [1], [1], [0, 0, 0, 1, 1, 1], [0], [0]>} : vector<1x8x8xbf16>, vector<1x8x8xbf16>, vector<1x8x8xf32> -> vector<1x8x8xf32>
    "tpu.trace_stop"() : () -> ()
    %cst_14 = arith.constant dense<0xFF800000> : vector<1x8xf32>
    %45 = vector.multi_reduction <maximumf>, %44, %cst_14 [2] : vector<1x8x8xf32> to vector<1x8xf32>
    %46 = vector.shape_cast %45 : vector<1x8xf32> to vector<1x8x1xf32>
    %47 = vector.broadcast %46 : vector<1x8x1xf32> to vector<1x8x8xf32>
    %48 = arith.subf %44, %47 : vector<1x8x8xf32>
    %49 = math.exp %48 : vector<1x8x8xf32>
    %cst_15 = arith.constant dense<0.000000e+00> : vector<1x8xf32>
    %50 = vector.multi_reduction <add>, %49, %cst_15 [2] : vector<1x8x8xf32> to vector<1x8xf32>
    %51 = vector.shape_cast %50 : vector<1x8xf32> to vector<1x8x1xf32>
    %52 = tpu.reciprocal %51 {approx = true} : vector<1x8x1xf32> -> vector<1x8x1xf32>
    %53 = vector.broadcast %52 : vector<1x8x1xf32> to vector<1x8x8xf32>
    %54 = arith.mulf %49, %53 : vector<1x8x8xf32>
    %55 = arith.truncf %54 : vector<1x8x8xf32> to vector<1x8x8xbf16>
    %56 = vector.extract_strided_slice %41 {offsets = [0, 0, 0], sizes = [1, 8, 8], strides = [1, 1, 1]} : vector<1x8x32xbf16> to vector<1x8x8xbf16>
    "tpu.trace_start"() <{level = 10 : i32, message = "bqk,bkd->bqd"}> : () -> ()
    %cst_16 = arith.constant dense<0.000000e+00> : vector<1x8x8xf32>
    %57 = tpu.matmul %55, %56, %cst_16 {dimension_numbers = #tpu.dot_dimension_numbers<[2], [1], [1], [2], [0, 0, 0, 1, 1, 2], [0], [0]>} : vector<1x8x8xbf16>, vector<1x8x8xbf16>, vector<1x8x8xf32> -> vector<1x8x8xf32>
    "tpu.trace_stop"() : () -> ()
    %58 = vector.extract_strided_slice %35 {offsets = [0, 0, 8], sizes = [1, 8, 8], strides = [1, 1, 1]} : vector<1x8x32xbf16> to vector<1x8x8xbf16>
    %59 = vector.extract_strided_slice %38 {offsets = [0, 0, 8], sizes = [1, 8, 8], strides = [1, 1, 1]} : vector<1x8x32xbf16> to vector<1x8x8xbf16>
    "tpu.trace_start"() <{level = 10 : i32, message = "bqd,bkd->bqk"}> : () -> ()
    %cst_17 = arith.constant dense<0.000000e+00> : vector<1x8x8xf32>
    %60 = tpu.matmul %58, %59, %cst_17 {dimension_numbers = #tpu.dot_dimension_numbers<[2], [2], [1], [1], [0, 0, 0, 1, 1, 1], [0], [0]>} : vector<1x8x8xbf16>, vector<1x8x8xbf16>, vector<1x8x8xf32> -> vector<1x8x8xf32>
    "tpu.trace_stop"() : () -> ()
    %cst_18 = arith.constant dense<0xFF800000> : vector<1x8xf32>
    %61 = vector.multi_reduction <maximumf>, %60, %cst_18 [2] : vector<1x8x8xf32> to vector<1x8xf32>
    %62 = vector.shape_cast %61 : vector<1x8xf32> to vector<1x8x1xf32>
    %63 = vector.broadcast %62 : vector<1x8x1xf32> to vector<1x8x8xf32>
    %64 = arith.subf %60, %63 : vector<1x8x8xf32>
    %65 = math.exp %64 : vector<1x8x8xf32>
    %cst_19 = arith.constant dense<0.000000e+00> : vector<1x8xf32>
    %66 = vector.multi_reduction <add>, %65, %cst_19 [2] : vector<1x8x8xf32> to vector<1x8xf32>
    %67 = vector.shape_cast %66 : vector<1x8xf32> to vector<1x8x1xf32>
    %68 = tpu.reciprocal %67 {approx = true} : vector<1x8x1xf32> -> vector<1x8x1xf32>
    %69 = vector.broadcast %68 : vector<1x8x1xf32> to vector<1x8x8xf32>
    %70 = arith.mulf %65, %69 : vector<1x8x8xf32>
    %71 = arith.truncf %70 : vector<1x8x8xf32> to vector<1x8x8xbf16>
    %72 = vector.extract_strided_slice %41 {offsets = [0, 0, 8], sizes = [1, 8, 8], strides = [1, 1, 1]} : vector<1x8x32xbf16> to vector<1x8x8xbf16>
    "tpu.trace_start"() <{level = 10 : i32, message = "bqk,bkd->bqd"}> : () -> ()
    %cst_20 = arith.constant dense<0.000000e+00> : vector<1x8x8xf32>
    %73 = tpu.matmul %71, %72, %cst_20 {dimension_numbers = #tpu.dot_dimension_numbers<[2], [1], [1], [2], [0, 0, 0, 1, 1, 2], [0], [0]>} : vector<1x8x8xbf16>, vector<1x8x8xbf16>, vector<1x8x8xf32> -> vector<1x8x8xf32>
    "tpu.trace_stop"() : () -> ()
    %74 = vector.extract_strided_slice %35 {offsets = [0, 0, 16], sizes = [1, 8, 8], strides = [1, 1, 1]} : vector<1x8x32xbf16> to vector<1x8x8xbf16>
    %75 = vector.extract_strided_slice %38 {offsets = [0, 0, 16], sizes = [1, 8, 8], strides = [1, 1, 1]} : vector<1x8x32xbf16> to vector<1x8x8xbf16>
    "tpu.trace_start"() <{level = 10 : i32, message = "bqd,bkd->bqk"}> : () -> ()
    %cst_21 = arith.constant dense<0.000000e+00> : vector<1x8x8xf32>
    %76 = tpu.matmul %74, %75, %cst_21 {dimension_numbers = #tpu.dot_dimension_numbers<[2], [2], [1], [1], [0, 0, 0, 1, 1, 1], [0], [0]>} : vector<1x8x8xbf16>, vector<1x8x8xbf16>, vector<1x8x8xf32> -> vector<1x8x8xf32>
    "tpu.trace_stop"() : () -> ()
    %cst_22 = arith.constant dense<0xFF800000> : vector<1x8xf32>
    %77 = vector.multi_reduction <maximumf>, %76, %cst_22 [2] : vector<1x8x8xf32> to vector<1x8xf32>
    %78 = vector.shape_cast %77 : vector<1x8xf32> to vector<1x8x1xf32>
    %79 = vector.broadcast %78 : vector<1x8x1xf32> to vector<1x8x8xf32>
    %80 = arith.subf %76, %79 : vector<1x8x8xf32>
    %81 = math.exp %80 : vector<1x8x8xf32>
    %cst_23 = arith.constant dense<0.000000e+00> : vector<1x8xf32>
    %82 = vector.multi_reduction <add>, %81, %cst_23 [2] : vector<1x8x8xf32> to vector<1x8xf32>
    %83 = vector.shape_cast %82 : vector<1x8xf32> to vector<1x8x1xf32>
    %84 = tpu.reciprocal %83 {approx = true} : vector<1x8x1xf32> -> vector<1x8x1xf32>
    %85 = vector.broadcast %84 : vector<1x8x1xf32> to vector<1x8x8xf32>
    %86 = arith.mulf %81, %85 : vector<1x8x8xf32>
    %87 = arith.truncf %86 : vector<1x8x8xf32> to vector<1x8x8xbf16>
    %88 = vector.extract_strided_slice %41 {offsets = [0, 0, 16], sizes = [1, 8, 8], strides = [1, 1, 1]} : vector<1x8x32xbf16> to vector<1x8x8xbf16>
    "tpu.trace_start"() <{level = 10 : i32, message = "bqk,bkd->bqd"}> : () -> ()
    %cst_24 = arith.constant dense<0.000000e+00> : vector<1x8x8xf32>
    %89 = tpu.matmul %87, %88, %cst_24 {dimension_numbers = #tpu.dot_dimension_numbers<[2], [1], [1], [2], [0, 0, 0, 1, 1, 2], [0], [0]>} : vector<1x8x8xbf16>, vector<1x8x8xbf16>, vector<1x8x8xf32> -> vector<1x8x8xf32>
    "tpu.trace_stop"() : () -> ()
    %90 = vector.extract_strided_slice %35 {offsets = [0, 0, 24], sizes = [1, 8, 8], strides = [1, 1, 1]} : vector<1x8x32xbf16> to vector<1x8x8xbf16>
    %91 = vector.extract_strided_slice %38 {offsets = [0, 0, 24], sizes = [1, 8, 8], strides = [1, 1, 1]} : vector<1x8x32xbf16> to vector<1x8x8xbf16>
    "tpu.trace_start"() <{level = 10 : i32, message = "bqd,bkd->bqk"}> : () -> ()
    %cst_25 = arith.constant dense<0.000000e+00> : vector<1x8x8xf32>
    %92 = tpu.matmul %90, %91, %cst_25 {dimension_numbers = #tpu.dot_dimension_numbers<[2], [2], [1], [1], [0, 0, 0, 1, 1, 1], [0], [0]>} : vector<1x8x8xbf16>, vector<1x8x8xbf16>, vector<1x8x8xf32> -> vector<1x8x8xf32>
    "tpu.trace_stop"() : () -> ()
    %cst_26 = arith.constant dense<0xFF800000> : vector<1x8xf32>
    %93 = vector.multi_reduction <maximumf>, %92, %cst_26 [2] : vector<1x8x8xf32> to vector<1x8xf32>
    %94 = vector.shape_cast %93 : vector<1x8xf32> to vector<1x8x1xf32>
    %95 = vector.broadcast %94 : vector<1x8x1xf32> to vector<1x8x8xf32>
    %96 = arith.subf %92, %95 : vector<1x8x8xf32>
    %97 = math.exp %96 : vector<1x8x8xf32>
    %cst_27 = arith.constant dense<0.000000e+00> : vector<1x8xf32>
    %98 = vector.multi_reduction <add>, %97, %cst_27 [2] : vector<1x8x8xf32> to vector<1x8xf32>
    %99 = vector.shape_cast %98 : vector<1x8xf32> to vector<1x8x1xf32>
    %100 = tpu.reciprocal %99 {approx = true} : vector<1x8x1xf32> -> vector<1x8x1xf32>
    %101 = vector.broadcast %100 : vector<1x8x1xf32> to vector<1x8x8xf32>
    %102 = arith.mulf %97, %101 : vector<1x8x8xf32>
    %103 = arith.truncf %102 : vector<1x8x8xf32> to vector<1x8x8xbf16>
    %104 = vector.extract_strided_slice %41 {offsets = [0, 0, 24], sizes = [1, 8, 8], strides = [1, 1, 1]} : vector<1x8x32xbf16> to vector<1x8x8xbf16>
    "tpu.trace_start"() <{level = 10 : i32, message = "bqk,bkd->bqd"}> : () -> ()
    %cst_28 = arith.constant dense<0.000000e+00> : vector<1x8x8xf32>
    %105 = tpu.matmul %103, %104, %cst_28 {dimension_numbers = #tpu.dot_dimension_numbers<[2], [1], [1], [2], [0, 0, 0, 1, 1, 2], [0], [0]>} : vector<1x8x8xbf16>, vector<1x8x8xbf16>, vector<1x8x8xf32> -> vector<1x8x8xf32>
    "tpu.trace_stop"() : () -> ()
    %106 = tpu.concatenate %57, %73, %89, %105 in 2 : vector<1x8x8xf32>, vector<1x8x8xf32>, vector<1x8x8xf32>, vector<1x8x8xf32> -> vector<1x8x32xf32>
    %107 = vector.shape_cast %106 : vector<1x8x32xf32> to vector<8x32xf32>
    %108 = arith.addf %107, %1 : vector<8x32xf32>
    %c0_29 = arith.constant 0 : index
    %c0_30 = arith.constant 0 : index
    %109 = vector.load %arg5[%c0_29, %c0_30] : memref<1x32xf32, #tpu.memory_space<vmem>>, vector<1x32xf32>
    %110 = vector.shape_cast %109 : vector<1x32xf32> to vector<32xf32>
    %c0_31 = arith.constant 0 : index
    %c0_32 = arith.constant 0 : index
    %111 = vector.load %arg6[%c0_31, %c0_32] : memref<1x32xf32, #tpu.memory_space<vmem>>, vector<1x32xf32>
    %112 = vector.shape_cast %111 : vector<1x32xf32> to vector<32xf32>
    %cst_33 = arith.constant dense<0.000000e+00> : vector<8xf32>
    %113 = vector.multi_reduction <add>, %108, %cst_33 [1] : vector<8x32xf32> to vector<8xf32>
    %114 = vector.shape_cast %113 : vector<8xf32> to vector<8x1xf32>
    %cst_34 = arith.constant 3.200000e+01 : f32
    %115 = vector.broadcast %cst_34 : f32 to vector<8x1xf32>
    %116 = arith.divf %114, %115 : vector<8x1xf32>
    %117 = arith.mulf %108, %108 : vector<8x32xf32>
    %cst_35 = arith.constant dense<0.000000e+00> : vector<8xf32>
    %118 = vector.multi_reduction <add>, %117, %cst_35 [1] : vector<8x32xf32> to vector<8xf32>
    %119 = vector.shape_cast %118 : vector<8xf32> to vector<8x1xf32>
    %cst_36 = arith.constant 3.200000e+01 : f32
    %120 = vector.broadcast %cst_36 : f32 to vector<8x1xf32>
    %121 = arith.divf %119, %120 : vector<8x1xf32>
    %122 = arith.mulf %116, %116 : vector<8x1xf32>
    %123 = arith.subf %121, %122 : vector<8x1xf32>
    %cst_37 = arith.constant 9.99999974E-6 : f32
    %124 = vector.broadcast %cst_37 : f32 to vector<8x1xf32>
    %125 = arith.addf %123, %124 : vector<8x1xf32>
    %126 = math.rsqrt %125 : vector<8x1xf32>
    %127 = vector.broadcast %116 : vector<8x1xf32> to vector<8x32xf32>
    %128 = arith.subf %108, %127 : vector<8x32xf32>
    %129 = vector.broadcast %126 : vector<8x1xf32> to vector<8x32xf32>
    %130 = arith.mulf %128, %129 : vector<8x32xf32>
    %131 = vector.shape_cast %110 : vector<32xf32> to vector<1x32xf32>
    %132 = vector.broadcast %131 : vector<1x32xf32> to vector<8x32xf32>
    %133 = arith.mulf %130, %132 : vector<8x32xf32>
    %134 = vector.shape_cast %112 : vector<32xf32> to vector<1x32xf32>
    %135 = vector.broadcast %134 : vector<1x32xf32> to vector<8x32xf32>
    %136 = arith.addf %133, %135 : vector<8x32xf32>
    %137 = arith.truncf %136 : vector<8x32xf32> to vector<8x32xbf16>
    %c0_38 = arith.constant 0 : index
    %c0_39 = arith.constant 0 : index
    %138 = vector.load %arg7[%c0_38, %c0_39] : memref<32x128xbf16, #tpu.memory_space<vmem>>, vector<32x128xbf16>
    %cst_40 = arith.constant dense<0.000000e+00> : vector<8x128xf32>
    %139 = tpu.matmul %137, %138, %cst_40 {dimension_numbers = #tpu.dot_dimension_numbers<[1], [0], [0], [1], [0, 0, 1, 1], [], []>} : vector<8x32xbf16>, vector<32x128xbf16>, vector<8x128xf32> -> vector<8x128xf32>
    %c0_41 = arith.constant 0 : index
    %c0_42 = arith.constant 0 : index
    %140 = vector.load %arg8[%c0_41, %c0_42] : memref<1x128xf32, #tpu.memory_space<vmem>>, vector<1x128xf32>
    %141 = vector.shape_cast %140 : vector<1x128xf32> to vector<128xf32>
    %142 = vector.shape_cast %141 : vector<128xf32> to vector<1x128xf32>
    %143 = vector.broadcast %142 : vector<1x128xf32> to vector<8x128xf32>
    %144 = arith.addf %139, %143 : vector<8x128xf32>
    %cst_43 = arith.constant 0.000000e+00 : f32
    %145 = vector.broadcast %cst_43 : f32 to vector<8x128xf32>
    %146 = arith.maximumf %144, %145 : vector<8x128xf32>
    %147 = arith.truncf %146 : vector<8x128xf32> to vector<8x128xbf16>
    %c0_44 = arith.constant 0 : index
    %c0_45 = arith.constant 0 : index
    %148 = vector.load %arg9[%c0_44, %c0_45] : memref<128x32xbf16, #tpu.memory_space<vmem>>, vector<128x32xbf16>
    %cst_46 = arith.constant dense<0.000000e+00> : vector<8x32xf32>
    %149 = tpu.matmul %147, %148, %cst_46 {dimension_numbers = #tpu.dot_dimension_numbers<[1], [0], [0], [1], [0, 0, 1, 1], [], []>} : vector<8x128xbf16>, vector<128x32xbf16>, vector<8x32xf32> -> vector<8x32xf32>
    %c0_47 = arith.constant 0 : index
    %c0_48 = arith.constant 0 : index
    %150 = vector.load %arg10[%c0_47, %c0_48] : memref<1x32xf32, #tpu.memory_space<vmem>>, vector<1x32xf32>
    %151 = vector.shape_cast %150 : vector<1x32xf32> to vector<32xf32>
    %152 = vector.shape_cast %151 : vector<32xf32> to vector<1x32xf32>
    %153 = vector.broadcast %152 : vector<1x32xf32> to vector<8x32xf32>
    %154 = arith.addf %149, %153 : vector<8x32xf32>
    %155 = arith.addf %154, %108 : vector<8x32xf32>
    %156 = vector.shape_cast %155 : vector<8x32xf32> to vector<1x8x32xf32>
    %c0_49 = arith.constant 0 : index
    %c0_50 = arith.constant 0 : index
    %c0_51 = arith.constant 0 : index
    %157 = vector.load %arg11[%c0_49, %c0_50, %c0_51] : memref<1x8x32xf32, #tpu.memory_space<vmem>>, vector<1x8x32xf32>
    tpu.vector_store %arg11[%c0_49, %c0_50, %c0_51], %156 {strides = array<i32>} : memref<1x8x32xf32, #tpu.memory_space<vmem>>, vector<1x8x32xf32>,
    return
  }
  func.func @transform_0(%arg0: i32) -> (i32, i32, i32) {
    %c0_i32 = arith.constant 0 : i32
    %c0_i32_0 = arith.constant 0 : i32
    %c0_i32_1 = arith.constant 0 : i32
    return %arg0, %c0_i32, %c0_i32_0 : i32, i32, i32
  }
  func.func @transform_1(%arg0: i32) -> (i32, i32) {
    %c0_i32 = arith.constant 0 : i32
    %c0_i32_0 = arith.constant 0 : i32
    %c0_i32_1 = arith.constant 0 : i32
    return %c0_i32, %c0_i32_0 : i32, i32
  }
  func.func @transform_2(%arg0: i32) -> (i32, i32) {
    %c0_i32 = arith.constant 0 : i32
    %c0_i32_0 = arith.constant 0 : i32
    %c0_i32_1 = arith.constant 0 : i32
    return %c0_i32, %c0_i32_0 : i32, i32
  }
  func.func @transform_3(%arg0: i32) -> (i32, i32) {
    %c0_i32 = arith.constant 0 : i32
    %c0_i32_0 = arith.constant 0 : i32
    %c0_i32_1 = arith.constant 0 : i32
    return %c0_i32, %c0_i32_0 : i32, i32
  }
  func.func @transform_4(%arg0: i32) -> (i32, i32) {
    %c0_i32 = arith.constant 0 : i32
    %c0_i32_0 = arith.constant 0 : i32
    %c0_i32_1 = arith.constant 0 : i32
    return %c0_i32, %c0_i32_0 : i32, i32
  }
  func.func @transform_5(%arg0: i32) -> (i32, i32) {
    %c0_i32 = arith.constant 0 : i32
    %c0_i32_0 = arith.constant 0 : i32
    %c0_i32_1 = arith.constant 0 : i32
    return %c0_i32, %c0_i32_0 : i32, i32
  }
  func.func @transform_6(%arg0: i32) -> (i32, i32) {
    %c0_i32 = arith.constant 0 : i32
    %c0_i32_0 = arith.constant 0 : i32
    %c0_i32_1 = arith.constant 0 : i32
    return %c0_i32, %c0_i32_0 : i32, i32
  }
  func.func @transform_7(%arg0: i32) -> (i32, i32) {
    %c0_i32 = arith.constant 0 : i32
    %c0_i32_0 = arith.constant 0 : i32
    %c0_i32_1 = arith.constant 0 : i32
    return %c0_i32, %c0_i32_0 : i32, i32
  }
  func.func @transform_8(%arg0: i32) -> (i32, i32) {
    %c0_i32 = arith.constant 0 : i32
    %c0_i32_0 = arith.constant 0 : i32
    %c0_i32_1 = arith.constant 0 : i32
    return %c0_i32, %c0_i32_0 : i32, i32
  }
  func.func @transform_9(%arg0: i32) -> (i32, i32) {
    %c0_i32 = arith.constant 0 : i32
    %c0_i32_0 = arith.constant 0 : i32
    %c0_i32_1 = arith.constant 0 : i32
    return %c0_i32, %c0_i32_0 : i32, i32
  }
  func.func @transform_10(%arg0: i32) -> (i32, i32, i32) {
    %c0_i32 = arith.constant 0 : i32
    %c0_i32_0 = arith.constant 0 : i32
    %c0_i32_1 = arith.constant 0 : i32
    return %arg0, %c0_i32, %c0_i32_0 : i32, i32, i32
  }
}

module attributes {stable_mosaic.version = 11 : i64} {
  func.func @block_kernel(%arg0: i32, %arg1: memref<1x8x32xf32, #tpu.memory_space<vmem>>, %arg2: memref<32x96xbf16, #tpu.memory_space<vmem>>, %arg3: memref<1x32xf32, #tpu.memory_space<vmem>>, %arg4: memref<1x32xf32, #tpu.memory_space<vmem>>, %arg5: memref<1x32xf32, #tpu.memory_space<vmem>>, %arg6: memref<1x32xf32, #tpu.memory_space<vmem>>, %arg7: memref<32x128xbf16, #tpu.memory_space<vmem>>, %arg8: memref<1x128xf32, #tpu.memory_space<vmem>>, %arg9: memref<128x32xbf16, #tpu.memory_space<vmem>>, %arg10: memref<1x32xf32, #tpu.memory_space<vmem>>, %arg11: memref<1x8x32xf32, #tpu.memory_space<vmem>>) attributes {dimension_semantics = [#tpu.dimension_semantics<parallel>], iteration_bounds = array<i64: 2>, scalar_prefetch = 0 : i64, scratch_operands = 0 : i64, tpu.core_type = #tpu.core_type<tc>, window_params = [{transform_indices = @transform_0, window_bounds = array<i64: 1, 8, 32>}, {pipeline_mode = #tpu.pipeline_mode<synchronous>, transform_indices = @transform_1, window_bounds = array<i64: 32, 96>}, {pipeline_mode = #tpu.pipeline_mode<synchronous>, transform_indices = @transform_2, window_bounds = array<i64: 1, 32>}, {pipeline_mode = #tpu.pipeline_mode<synchronous>, transform_indices = @transform_3, window_bounds = array<i64: 1, 32>}, {pipeline_mode = #tpu.pipeline_mode<synchronous>, transform_indices = @transform_4, window_bounds = array<i64: 1, 32>}, {pipeline_mode = #tpu.pipeline_mode<synchronous>, transform_indices = @transform_5, window_bounds = array<i64: 1, 32>}, {pipeline_mode = #tpu.pipeline_mode<synchronous>, transform_indices = @transform_6, window_bounds = array<i64: 32, 128>}, {pipeline_mode = #tpu.pipeline_mode<synchronous>, transform_indices = @transform_7, window_bounds = array<i64: 1, 128>}, {pipeline_mode = #tpu.pipeline_mode<synchronous>, transform_indices = @transform_8, window_bounds = array<i64: 128, 32>}, {pipeline_mode = #tpu.pipeline_mode<synchronous>, transform_indices = @transform_9, window_bounds = array<i64: 1, 32>}, {transform_indices = @transform_10, window_bounds = array<i64: 1, 8, 32>}]} {
    %c0 = arith.constant 0 : index
    %c0_0 = arith.constant 0 : index
    %c0_1 = arith.constant 0 : index
    %0 = vector.load %arg1[%c0, %c0_0, %c0_1] : memref<1x8x32xf32, #tpu.memory_space<vmem>>, vector<1x8x32xf32>
    %1 = vector.shape_cast %0 : vector<1x8x32xf32> to vector<8x32xf32>
    %c0_2 = arith.constant 0 : index
    %c0_3 = arith.constant 0 : index
    %2 = vector.load %arg3[%c0_2, %c0_3] : memref<1x32xf32, #tpu.memory_space<vmem>>, vector<1x32xf32>
    %3 = vector.shape_cast %2 : vector<1x32xf32> to vector<32xf32>
    %c0_4 = arith.constant 0 : index
    %c0_5 = arith.constant 0 : index
    %4 = vector.load %arg4[%c0_4, %c0_5] : memref<1x32xf32, #tpu.memory_space<vmem>>, vector<1x32xf32>
    %5 = vector.shape_cast %4 : vector<1x32xf32> to vector<32xf32>
    %cst = arith.constant dense<0.000000e+00> : vector<8xf32>
    %6 = vector.multi_reduction <add>, %1, %cst [1] : vector<8x32xf32> to vector<8xf32>
    %7 = vector.shape_cast %6 : vector<8xf32> to vector<8x1xf32>
    %cst_6 = arith.constant 3.200000e+01 : f32
    %8 = vector.broadcast %cst_6 : f32 to vector<8x1xf32>
    %9 = arith.divf %7, %8 : vector<8x1xf32>
    %10 = arith.mulf %1, %1 : vector<8x32xf32>
    %cst_7 = arith.constant dense<0.000000e+00> : vector<8xf32>
    %11 = vector.multi_reduction <add>, %10, %cst_7 [1] : vector<8x32xf32> to vector<8xf32>
    %12 = vector.shape_cast %11 : vector<8xf32> to vector<8x1xf32>
    %cst_8 = arith.constant 3.200000e+01 : f32
    %13 = vector.broadcast %cst_8 : f32 to vector<8x1xf32>
    %14 = arith.divf %12, %13 : vector<8x1xf32>
    %15 = arith.mulf %9, %9 : vector<8x1xf32>
    %16 = arith.subf %14, %15 : vector<8x1xf32>
    %cst_9 = arith.constant 9.99999974E-6 : f32
    %17 = vector.broadcast %cst_9 : f32 to vector<8x1xf32>
    %18 = arith.addf %16, %17 : vector<8x1xf32>
    %19 = math.rsqrt %18 : vector<8x1xf32>
    %20 = vector.broadcast %9 : vector<8x1xf32> to vector<8x32xf32>
    %21 = arith.subf %1, %20 : vector<8x32xf32>
    %22 = vector.broadcast %19 : vector<8x1xf32> to vector<8x32xf32>
    %23 = arith.mulf %21, %22 : vector<8x32xf32>
    %24 = vector.shape_cast %3 : vector<32xf32> to vector<1x32xf32>
    %25 = vector.broadcast %24 : vector<1x32xf32> to vector<8x32xf32>
    %26 = arith.mulf %23, %25 : vector<8x32xf32>
    %27 = vector.shape_cast %5 : vector<32xf32> to vector<1x32xf32>
    %28 = vector.broadcast %27 : vector<1x32xf32> to vector<8x32xf32>
    %29 = arith.addf %26, %28 : vector<8x32xf32>
    %30 = arith.truncf %29 : vector<8x32xf32> to vector<8x32xbf16>
    %c0_10 = arith.constant 0 : index
    %c0_11 = arith.constant 0 : index
    %31 = vector.load %arg2[%c0_10, %c0_11] : memref<32x96xbf16, #tpu.memory_space<vmem>>, vector<32x96xbf16>
    %cst_12 = arith.constant dense<0.000000e+00> : vector<8x96xf32>
    %32 = tpu.matmul %30, %31, %cst_12 {dimension_numbers = #tpu.dot_dimension_numbers<[1], [0], [0], [1], [0, 0, 1, 1], [], []>} : vector<8x32xbf16>, vector<32x96xbf16>, vector<8x96xf32> -> vector<8x96xf32>
    %33 = vector.extract_strided_slice %32 {offsets = [0, 0], sizes = [8, 32], strides = [1, 1]} : vector<8x96xf32> to vector<8x32xf32>
    %34 = vector.shape_cast %33 : vector<8x32xf32> to vector<1x8x32xf32>
    %35 = arith.truncf %34 : vector<1x8x32xf32> to vector<1x8x32xbf16>
    %36 = vector.extract_strided_slice %32 {offsets = [0, 32], sizes = [8, 32], strides = [1, 1]} : vector<8x96xf32> to vector<8x32xf32>
    %37 = vector.shape_cast %36 : vector<8x32xf32> to vector<1x8x32xf32>
    %38 = arith.truncf %37 : vector<1x8x32xf32> to vector<1x8x32xbf16>
    %39 = vector.extract_strided_slice %32 {offsets = [0, 64], sizes = [8, 32], strides = [1, 1]} : vector<8x96xf32> to vector<8x32xf32>
    %40 = vector.shape_cast %39 : vector<8x32xf32> to vector<1x8x32xf32>
    %41 = arith.truncf %40 : vector<1x8x32xf32> to vector<1x8x32xbf16>
    %42 = vector.extract_strided_slice %35 {offsets = [0, 0, 0], sizes = [1, 8, 8], strides = [1, 1, 1]} : vector<1x8x32xbf16> to vector<1x8x8xbf16>
    %43 = vector.extract_strided_slice %38 {offsets = [0, 0, 0], sizes = [1, 8, 8], strides = [1, 1, 1]} : vector<1x8x32xbf16> to vector<1x8x8xbf16>
    "tpu.trace_start"() <{level = 10 : i32, message = "bqd,bkd->bqk"}> : () -> ()
    %cst_13 = arith.constant dense<0.000000e+00> : vector<1x8x8xf32>
    %44 = tpu.matmul %42, %43, %cst_13 {dimension_numbers = #tpu.dot_dimension_numbers<[2], [2], [1], [1], [0, 0, 0, 1, 1, 1], [0], [0]>} : vector<1x8x8xbf16>, vector<1x8x8xbf16>, vector<1x8x8xf32> -> vector<1x8x8xf32>
    "tpu.trace_stop"() : () -> ()
    %cst_14 = arith.constant dense<0xFF800000> : vector<1x8xf32>
    %45 = vector.multi_reduction <maximumf>, %44, %cst_14 [2] : vector<1x8x8xf32> to vector<1x8xf32>
    %46 = vector.shape_cast %45 : vector<1x8xf32> to vector<1x8x1xf32>
    %47 = vector.broadcast %46 : vector<1x8x1xf32> to vector<1x8x8xf32>
    %48 = arith.subf %44, %47 : vector<1x8x8xf32>
    %49 = math.exp %48 : vector<1x8x8xf32>
    %cst_15 = arith.constant dense<0.000000e+00> : vector<1x8xf32>
    %50 = vector.multi_reduction <add>, %49, %cst_15 [2] : vector<1x8x8xf32> to vector<1x8xf32>
    %51 = vector.shape_cast %50 : vector<1x8xf32> to vector<1x8x1xf32>
    %52 = tpu.reciprocal %51 {approx = true} : vector<1x8x1xf32> -> vector<1x8x1xf32>
    %53 = vector.broadcast %52 : vector<1x8x1xf32> to vector<1x8x8xf32>
    %54 = arith.mulf %49, %53 : vector<1x8x8xf32>
    %55 = arith.truncf %54 : vector<1x8x8xf32> to vector<1x8x8xbf16>
    %56 = vector.extract_strided_slice %41 {offsets = [0, 0, 0], sizes = [1, 8, 8], strides = [1, 1, 1]} : vector<1x8x32xbf16> to vector<1x8x8xbf16>
    "tpu.trace_start"() <{level = 10 : i32, message = "bqk,bkd->bqd"}> : () -> ()
    %cst_16 = arith.constant dense<0.000000e+00> : vector<1x8x8xf32>
    %57 = tpu.matmul %55, %56, %cst_16 {dimension_numbers = #tpu.dot_dimension_numbers<[2], [1], [1], [2], [0, 0, 0, 1, 1, 2], [0], [0]>} : vector<1x8x8xbf16>, vector<1x8x8xbf16>, vector<1x8x8xf32> -> vector<1x8x8xf32>
    "tpu.trace_stop"() : () -> ()
    %58 = vector.extract_strided_slice %35 {offsets = [0, 0, 8], sizes = [1, 8, 8], strides = [1, 1, 1]} : vector<1x8x32xbf16> to vector<1x8x8xbf16>
    %59 = vector.extract_strided_slice %38 {offsets = [0, 0, 8], sizes = [1, 8, 8], strides = [1, 1, 1]} : vector<1x8x32xbf16> to vector<1x8x8xbf16>
    "tpu.trace_start"() <{level = 10 : i32, message = "bqd,bkd->bqk"}> : () -> ()
    %cst_17 = arith.constant dense<0.000000e+00> : vector<1x8x8xf32>
    %60 = tpu.matmul %58, %59, %cst_17 {dimension_numbers = #tpu.dot_dimension_numbers<[2], [2], [1], [1], [0, 0, 0, 1, 1, 1], [0], [0]>} : vector<1x8x8xbf16>, vector<1x8x8xbf16>, vector<1x8x8xf32> -> vector<1x8x8xf32>
    "tpu.trace_stop"() : () -> ()
    %cst_18 = arith.constant dense<0xFF800000> : vector<1x8xf32>
    %61 = vector.multi_reduction <maximumf>, %60, %cst_18 [2] : vector<1x8x8xf32> to vector<1x8xf32>
    %62 = vector.shape_cast %61 : vector<1x8xf32> to vector<1x8x1xf32>
    %63 = vector.broadcast %62 : vector<1x8x1xf32> to vector<1x8x8xf32>
    %64 = arith.subf %60, %63 : vector<1x8x8xf32>
    %65 = math.exp %64 : vector<1x8x8xf32>
    %cst_19 = arith.constant dense<0.000000e+00> : vector<1x8xf32>
    %66 = vector.multi_reduction <add>, %65, %cst_19 [2] : vector<1x8x8xf32> to vector<1x8xf32>
    %67 = vector.shape_cast %66 : vector<1x8xf32> to vector<1x8x1xf32>
    %68 = tpu.reciprocal %67 {approx = true} : vector<1x8x1xf32> -> vector<1x8x1xf32>
    %69 = vector.broadcast %68 : vector<1x8x1xf32> to vector<1x8x8xf32>
    %70 = arith.mulf %65, %69 : vector<1x8x8xf32>
    %71 = arith.truncf %70 : vector<1x8x8xf32> to vector<1x8x8xbf16>
    %72 = vector.extract_strided_slice %41 {offsets = [0, 0, 8], sizes = [1, 8, 8], strides = [1, 1, 1]} : vector<1x8x32xbf16> to vector<1x8x8xbf16>
    "tpu.trace_start"() <{level = 10 : i32, message = "bqk,bkd->bqd"}> : () -> ()
    %cst_20 = arith.constant dense<0.000000e+00> : vector<1x8x8xf32>
    %73 = tpu.matmul %71, %72, %cst_20 {dimension_numbers = #tpu.dot_dimension_numbers<[2], [1], [1], [2], [0, 0, 0, 1, 1, 2], [0], [0]>} : vector<1x8x8xbf16>, vector<1x8x8xbf16>, vector<1x8x8xf32> -> vector<1x8x8xf32>
    "tpu.trace_stop"() : () -> ()
    %74 = vector.extract_strided_slice %35 {offsets = [0, 0, 16], sizes = [1, 8, 8], strides = [1, 1, 1]} : vector<1x8x32xbf16> to vector<1x8x8xbf16>
    %75 = vector.extract_strided_slice %38 {offsets = [0, 0, 16], sizes = [1, 8, 8], strides = [1, 1, 1]} : vector<1x8x32xbf16> to vector<1x8x8xbf16>
    "tpu.trace_start"() <{level = 10 : i32, message = "bqd,bkd->bqk"}> : () -> ()
    %cst_21 = arith.constant dense<0.000000e+00> : vector<1x8x8xf32>
    %76 = tpu.matmul %74, %75, %cst_21 {dimension_numbers = #tpu.dot_dimension_numbers<[2], [2], [1], [1], [0, 0, 0, 1, 1, 1], [0], [0]>} : vector<1x8x8xbf16>, vector<1x8x8xbf16>, vector<1x8x8xf32> -> vector<1x8x8xf32>
    "tpu.trace_stop"() : () -> ()
    %cst_22 = arith.constant dense<0xFF800000> : vector<1x8xf32>
    %77 = vector.multi_reduction <maximumf>, %76, %cst_22 [2] : vector<1x8x8xf32> to vector<1x8xf32>
    %78 = vector.shape_cast %77 : vector<1x8xf32> to vector<1x8x1xf32>
    %79 = vector.broadcast %78 : vector<1x8x1xf32> to vector<1x8x8xf32>
    %80 = arith.subf %76, %79 : vector<1x8x8xf32>
    %81 = math.exp %80 : vector<1x8x8xf32>
    %cst_23 = arith.constant dense<0.000000e+00> : vector<1x8xf32>
    %82 = vector.multi_reduction <add>, %81, %cst_23 [2] : vector<1x8x8xf32> to vector<1x8xf32>
    %83 = vector.shape_cast %82 : vector<1x8xf32> to vector<1x8x1xf32>
    %84 = tpu.reciprocal %83 {approx = true} : vector<1x8x1xf32> -> vector<1x8x1xf32>
    %85 = vector.broadcast %84 : vector<1x8x1xf32> to vector<1x8x8xf32>
    %86 = arith.mulf %81, %85 : vector<1x8x8xf32>
    %87 = arith.truncf %86 : vector<1x8x8xf32> to vector<1x8x8xbf16>
    %88 = vector.extract_strided_slice %41 {offsets = [0, 0, 16], sizes = [1, 8, 8], strides = [1, 1, 1]} : vector<1x8x32xbf16> to vector<1x8x8xbf16>
    "tpu.trace_start"() <{level = 10 : i32, message = "bqk,bkd->bqd"}> : () -> ()
    %cst_24 = arith.constant dense<0.000000e+00> : vector<1x8x8xf32>
    %89 = tpu.matmul %87, %88, %cst_24 {dimension_numbers = #tpu.dot_dimension_numbers<[2], [1], [1], [2], [0, 0, 0, 1, 1, 2], [0], [0]>} : vector<1x8x8xbf16>, vector<1x8x8xbf16>, vector<1x8x8xf32> -> vector<1x8x8xf32>
    "tpu.trace_stop"() : () -> ()
    %90 = vector.extract_strided_slice %35 {offsets = [0, 0, 24], sizes = [1, 8, 8], strides = [1, 1, 1]} : vector<1x8x32xbf16> to vector<1x8x8xbf16>
    %91 = vector.extract_strided_slice %38 {offsets = [0, 0, 24], sizes = [1, 8, 8], strides = [1, 1, 1]} : vector<1x8x32xbf16> to vector<1x8x8xbf16>
    "tpu.trace_start"() <{level = 10 : i32, message = "bqd,bkd->bqk"}> : () -> ()
    %cst_25 = arith.constant dense<0.000000e+00> : vector<1x8x8xf32>
    %92 = tpu.matmul %90, %91, %cst_25 {dimension_numbers = #tpu.dot_dimension_numbers<[2], [2], [1], [1], [0, 0, 0, 1, 1, 1], [0], [0]>} : vector<1x8x8xbf16>, vector<1x8x8xbf16>, vector<1x8x8xf32> -> vector<1x8x8xf32>
    "tpu.trace_stop"() : () -> ()
    %cst_26 = arith.constant dense<0xFF800000> : vector<1x8xf32>
    %93 = vector.multi_reduction <maximumf>, %92, %cst_26 [2] : vector<1x8x8xf32> to vector<1x8xf32>
    %94 = vector.shape_cast %93 : vector<1x8xf32> to vector<1x8x1xf32>
    %95 = vector.broadcast %94 : vector<1x8x1xf32> to vector<1x8x8xf32>
    %96 = arith.subf %92, %95 : vector<1x8x8xf32>
    %97 = math.exp %96 : vector<1x8x8xf32>
    %cst_27 = arith.constant dense<0.000000e+00> : vector<1x8xf32>
    %98 = vector.multi_reduction <add>, %97, %cst_27 [2] : vector<1x8x8xf32> to vector<1x8xf32>
    %99 = vector.shape_cast %98 : vector<1x8xf32> to vector<1x8x1xf32>
    %100 = tpu.reciprocal %99 {approx = true} : vector<1x8x1xf32> -> vector<1x8x1xf32>
    %101 = vector.broadcast %100 : vector<1x8x1xf32> to vector<1x8x8xf32>
    %102 = arith.mulf %97, %101 : vector<1x8x8xf32>
    %103 = arith.truncf %102 : vector<1x8x8xf32> to vector<1x8x8xbf16>
    %104 = vector.extract_strided_slice %41 {offsets = [0, 0, 24], sizes = [1, 8, 8], strides = [1, 1, 1]} : vector<1x8x32xbf16> to vector<1x8x8xbf16>
    "tpu.trace_start"() <{level = 10 : i32, message = "bqk,bkd->bqd"}> : () -> ()
    %cst_28 = arith.constant dense<0.000000e+00> : vector<1x8x8xf32>
    %105 = tpu.matmul %103, %104, %cst_28 {dimension_numbers = #tpu.dot_dimension_numbers<[2], [1], [1], [2], [0, 0, 0, 1, 1, 2], [0], [0]>} : vector<1x8x8xbf16>, vector<1x8x8xbf16>, vector<1x8x8xf32> -> vector<1x8x8xf32>
    "tpu.trace_stop"() : () -> ()
    %106 = tpu.concatenate %57, %73, %89, %105 in 2 : vector<1x8x8xf32>, vector<1x8x8xf32>, vector<1x8x8xf32>, vector<1x8x8xf32> -> vector<1x8x32xf32>
    %107 = vector.shape_cast %106 : vector<1x8x32xf32> to vector<8x32xf32>
    %108 = arith.addf %107, %1 : vector<8x32xf32>
    %c0_29 = arith.constant 0 : index
    %c0_30 = arith.constant 0 : index
    %109 = vector.load %arg5[%c0_29, %c0_30] : memref<1x32xf32, #tpu.memory_space<vmem>>, vector<1x32xf32>
    %110 = vector.shape_cast %109 : vector<1x32xf32> to vector<32xf32>
    %c0_31 = arith.constant 0 : index
    %c0_32 = arith.constant 0 : index
    %111 = vector.load %arg6[%c0_31, %c0_32] : memref<1x32xf32, #tpu.memory_space<vmem>>, vector<1x32xf32>
    %112 = vector.shape_cast %111 : vector<1x32xf32> to vector<32xf32>
    %cst_33 = arith.constant dense<0.000000e+00> : vector<8xf32>
    %113 = vector.multi_reduction <add>, %108, %cst_33 [1] : vector<8x32xf32> to vector<8xf32>
    %114 = vector.shape_cast %113 : vector<8xf32> to vector<8x1xf32>
    %cst_34 = arith.constant 3.200000e+01 : f32
    %115 = vector.broadcast %cst_34 : f32 to vector<8x1xf32>
    %116 = arith.divf %114, %115 : vector<8x1xf32>
    %117 = arith.mulf %108, %108 : vector<8x32xf32>
    %cst_35 = arith.constant dense<0.000000e+00> : vector<8xf32>
    %118 = vector.multi_reduction <add>, %117, %cst_35 [1] : vector<8x32xf32> to vector<8xf32>
    %119 = vector.shape_cast %118 : vector<8xf32> to vector<8x1xf32>
    %cst_36 = arith.constant 3.200000e+01 : f32
    %120 = vector.broadcast %cst_36 : f32 to vector<8x1xf32>
    %121 = arith.divf %119, %120 : vector<8x1xf32>
    %122 = arith.mulf %116, %116 : vector<8x1xf32>
    %123 = arith.subf %121, %122 : vector<8x1xf32>
    %cst_37 = arith.constant 9.99999974E-6 : f32
    %124 = vector.broadcast %cst_37 : f32 to vector<8x1xf32>
    %125 = arith.addf %123, %124 : vector<8x1xf32>
    %126 = math.rsqrt %125 : vector<8x1xf32>
    %127 = vector.broadcast %116 : vector<8x1xf32> to vector<8x32xf32>
    %128 = arith.subf %108, %127 : vector<8x32xf32>
    %129 = vector.broadcast %126 : vector<8x1xf32> to vector<8x32xf32>
    %130 = arith.mulf %128, %129 : vector<8x32xf32>
    %131 = vector.shape_cast %110 : vector<32xf32> to vector<1x32xf32>
    %132 = vector.broadcast %131 : vector<1x32xf32> to vector<8x32xf32>
    %133 = arith.mulf %130, %132 : vector<8x32xf32>
    %134 = vector.shape_cast %112 : vector<32xf32> to vector<1x32xf32>
    %135 = vector.broadcast %134 : vector<1x32xf32> to vector<8x32xf32>
    %136 = arith.addf %133, %135 : vector<8x32xf32>
    %137 = arith.truncf %136 : vector<8x32xf32> to vector<8x32xbf16>
    %c0_38 = arith.constant 0 : index
    %c0_39 = arith.constant 0 : index
    %138 = vector.load %arg7[%c0_38, %c0_39] : memref<32x128xbf16, #tpu.memory_space<vmem>>, vector<32x128xbf16>
    %cst_40 = arith.constant dense<0.000000e+00> : vector<8x128xf32>
    %139 = tpu.matmul %137, %138, %cst_40 {dimension_numbers = #tpu.dot_dimension_numbers<[1], [0], [0], [1], [0, 0, 1, 1], [], []>} : vector<8x32xbf16>, vector<32x128xbf16>, vector<8x128xf32> -> vector<8x128xf32>
    %c0_41 = arith.constant 0 : index
    %c0_42 = arith.constant 0 : index
    %140 = vector.load %arg8[%c0_41, %c0_42] : memref<1x128xf32, #tpu.memory_space<vmem>>, vector<1x128xf32>
    %141 = vector.shape_cast %140 : vector<1x128xf32> to vector<128xf32>
    %142 = vector.shape_cast %141 : vector<128xf32> to vector<1x128xf32>
    %143 = vector.broadcast %142 : vector<1x128xf32> to vector<8x128xf32>
    %144 = arith.addf %139, %143 : vector<8x128xf32>
    %cst_43 = arith.constant 0.000000e+00 : f32
    %145 = vector.broadcast %cst_43 : f32 to vector<8x128xf32>
    %146 = arith.maximumf %144, %145 : vector<8x128xf32>
    %147 = arith.truncf %146 : vector<8x128xf32> to vector<8x128xbf16>
    %c0_44 = arith.constant 0 : index
    %c0_45 = arith.constant 0 : index
    %148 = vector.load %arg9[%c0_44, %c0_45] : memref<128x32xbf16, #tpu.memory_space<vmem>>, vector<128x32xbf16>
    %cst_46 = arith.constant dense<0.000000e+00> : vector<8x32xf32>
    %149 = tpu.matmul %147, %148, %cst_46 {dimension_numbers = #tpu.dot_dimension_numbers<[1], [0], [0], [1], [0, 0, 1, 1], [], []>} : vector<8x128xbf16>, vector<128x32xbf16>, vector<8x32xf32> -> vector<8x32xf32>
    %c0_47 = arith.constant 0 : index
    %c0_48 = arith.constant 0 : index
    %150 = vector.load %arg10[%c0_47, %c0_48] : memref<1x32xf32, #tpu.memory_space<vmem>>, vector<1x32xf32>
    %151 = vector.shape_cast %150 : vector<1x32xf32> to vector<32xf32>
    %152 = vector.shape_cast %151 : vector<32xf32> to vector<1x32xf32>
    %153 = vector.broadcast %152 : vector<1x32xf32> to vector<8x32xf32>
    %154 = arith.addf %149, %153 : vector<8x32xf32>
    %155 = arith.addf %154, %108 : vector<8x32xf32>
    %156 = vector.shape_cast %155 : vector<8x32xf32> to vector<1x8x32xf32>
    %c0_49 = arith.constant 0 : index
    %c0_50 = arith.constant 0 : index
    %c0_51 = arith.constant 0 : index
    %157 = vector.load %arg11[%c0_49, %c0_50, %c0_51] : memref<1x8x32xf32, #tpu.memory_space<vmem>>, vector<1x8x32xf32>
    tpu.vector_store %arg11[%c0_49, %c0_50, %c0_51], %156 {strides = array<i32>} : memref<1x8x32xf32, #tpu.memory_space<vmem>>, vector<1x8x32xf32>,
    return
  }
  func.func @transform_0(%arg0: i32) -> (i32, i32, i32) {
    %c0_i32 = arith.constant 0 : i32
    %c0_i32_0 = arith.constant 0 : i32
    %c0_i32_1 = arith.constant 0 : i32
    return %arg0, %c0_i32, %c0_i32_0 : i32, i32, i32
  }
  func.func @transform_1(%arg0: i32) -> (i32, i32) {
    %c0_i32 = arith.constant 0 : i32
    %c0_i32_0 = arith.constant 0 : i32
    %c0_i32_1 = arith.constant 0 : i32
    return %c0_i32, %c0_i32_0 : i32, i32
  }
  func.func @transform_2(%arg0: i32) -> (i32, i32) {
    %c0_i32 = arith.constant 0 : i32
    %c0_i32_0 = arith.constant 0 : i32
    %c0_i32_1 = arith.constant 0 : i32
    return %c0_i32, %c0_i32_0 : i32, i32
  }
  func.func @transform_3(%arg0: i32) -> (i32, i32) {
    %c0_i32 = arith.constant 0 : i32
    %c0_i32_0 = arith.constant 0 : i32
    %c0_i32_1 = arith.constant 0 : i32
    return %c0_i32, %c0_i32_0 : i32, i32
  }
  func.func @transform_4(%arg0: i32) -> (i32, i32) {
    %c0_i32 = arith.constant 0 : i32
    %c0_i32_0 = arith.constant 0 : i32
    %c0_i32_1 = arith.constant 0 : i32
    return %c0_i32, %c0_i32_0 : i32, i32
  }
  func.func @transform_5(%arg0: i32) -> (i32, i32) {
    %c0_i32 = arith.constant 0 : i32
    %c0_i32_0 = arith.constant 0 : i32
    %c0_i32_1 = arith.constant 0 : i32
    return %c0_i32, %c0_i32_0 : i32, i32
  }
  func.func @transform_6(%arg0: i32) -> (i32, i32) {
    %c0_i32 = arith.constant 0 : i32
    %c0_i32_0 = arith.constant 0 : i32
    %c0_i32_1 = arith.constant 0 : i32
    return %c0_i32, %c0_i32_0 : i32, i32
  }
  func.func @transform_7(%arg0: i32) -> (i32, i32) {
    %c0_i32 = arith.constant 0 : i32
    %c0_i32_0 = arith.constant 0 : i32
    %c0_i32_1 = arith.constant 0 : i32
    return %c0_i32, %c0_i32_0 : i32, i32
  }
  func.func @transform_8(%arg0: i32) -> (i32, i32) {
    %c0_i32 = arith.constant 0 : i32
    %c0_i32_0 = arith.constant 0 : i32
    %c0_i32_1 = arith.constant 0 : i32
    return %c0_i32, %c0_i32_0 : i32, i32
  }
  func.func @transform_9(%arg0: i32) -> (i32, i32) {
    %c0_i32 = arith.constant 0 : i32
    %c0_i32_0 = arith.constant 0 : i32
    %c0_i32_1 = arith.constant 0 : i32
    return %c0_i32, %c0_i32_0 : i32, i32
  }
  func.func @transform_10(%arg0: i32) -> (i32, i32, i32) {
    %c0_i32 = arith.constant 0 : i32
    %c0_i32_0 = arith.constant 0 : i32
    %c0_i32_1 = arith.constant 0 : i32
    return %arg0, %c0_i32, %c0_i32_0 : i32, i32, i32
  }
}

</mosaic_0001>

<bundles_post_ra>
// kernel: tpu_custom_call.1
= control target key start
LH: loop header
LB: loop body
LE: loop exit
PB: predicated region body
PF: predicated region fallthrough
CT: control target
= control target key end

     0   :  { %15 = vsyncpa [#allocation3], 0  ;;  %s1831_s0 = inlined_call_operand.vmem [shape: f32[2,8,32], index: 0, kind: input, shape index: {}]   ;;  %s1832_s1 = inlined_call_operand.vmem [shape: bf16[32,96], index: 1, kind: input, shape index: {}]   ;;  %s1833_s2 = inlined_call_operand.vmem [shape: f32[1,32], index: 2, kind: input, shape index: {}]   ;;  %s1834_s3 = inlined_call_operand.vmem [shape: f32[1,32], index: 3, kind: input, shape index: {}]   ;;  %s1835_s4 = inlined_call_operand.vmem [shape: f32[1,32], index: 4, kind: input, shape index: {}]   ;;  %s1836_s5 = inlined_call_operand.vmem [shape: f32[1,32], index: 5, kind: input, shape index: {}]   ;;  %s1837_s6 = inlined_call_operand.vmem [shape: bf16[32,128], index: 6, kind: input, shape index: {}]   ;;  %s1838_s7 = inlined_call_operand.vmem [shape: f32[1,128], index: 7, kind: input, shape index: {}]   ;;  %s1839_s8 = inlined_call_operand.vmem [shape: bf16[128,32], index: 8, kind: input, shape index: {}]   ;;  %s1840_s9 = inlined_call_operand.vmem [shape: f32[1,32], index: 9, kind: input, shape index: {}]   ;;  %s1841_s10 = inlined_call_operand.hbm [shape: f32[2,8,32], index: 10, kind: output, shape index: {}]  }
   0x1   :  { %17 = vsyncpa [#allocation3 + $0x1], 0  ;;  %s1572_s13 = smov 0   ;;  %s1574_s14 = smov 0  }
   0x2   :  { %s1576_s15 = smov 0   ;;  %s1578_s16 = smov 0  }
   0x3 LB: > { %s1593_s17 = sadd.s32 4294967295, %s1498_s16   ;;  %s1196_s18 = sadd.s32 4294967294, %s1498_s16   ;;  %s1498_s16 = sphi %s1578_s16, %s1847_s16   ;;  %s1494_s15 = sphi %s1576_s15, %s1846_s15   ;;  %s1490_s14 = sphi %s1574_s14, %s1845_s14   ;;  %s1486_s13 = sphi %s1572_s13, %s1844_s13  }
   0x4   : > { %s1597_s19 = sadd.s32 1, %s1498_s16   ;;  %s245_s20 = sadd.s32 1, %s1494_s15 }
   0x5   : > { %s242_s21 = ssub.s32 %s1498_s16, %s1597_s19  ;;  %p255_p0 = scmp.ne.s32.totalorder %s1494_s15, %s1490_s14 }
   0x6   : > { %p243_p1 = scmp.eq.s32.totalorder %s242_s21, 0  ;;  %p256_p2 = scmp.eq.s32.totalorder %s1593_s17, 1 }
   0x7   : > { %p261_p3 = scmp.ne.s32.totalorder %s1490_s14, %s1486_s13  ;;  %p262_p4 = scmp.eq.s32.totalorder %s1196_s18, 1 }
   0x8   : > { %s1608_s22 = scalar_select %p243_p1, %s1494_s15, %s245_s20  }
   0x9   : > { %p1610_p5 = por %p256_p2, %p255_p0  ;;  %p1614_p6 = por %p262_p4, %p261_p3 }
   0xa   : > { %p1199_p7 = scmp.ge.s32.totalorder %s1498_s16, 1  ;;  %p314_p8 = scmp.lt.s32.totalorder %s1498_s16, 3 }
   0xc   : > { %p315_p9 = pnand %p1199_p7, %p314_p8 }
   0xd   : > { %p351_p10 = scmp.lt.s32.totalorder (!%p315_p9), %s1593_s17, 1  ;;  %vm359_vm0 = vcmask (!%p315_p9), 261120   ;;  %v1404_v4 = vld [vmem:[%s1832_s1] sm:$0xff] (!%p315_p9)   ;;  %v1500_v5 = vmov (!%p315_p9), 0.0   ;;  %vm1501_vm1 = vmmov (!%p315_p9), 0   ;;  %v1405_v6 = vld [vmem:[%s1832_s1 + $0x8] sm:$0xff] (!%p315_p9)  }
   0xe   : > { %318 = sbr.rel (%p315_p9) target bundleno = 2564 (0xa04), region = 60  ;;  %1265 = vmatprep.subr.bf16.mxu1 (!%p315_p9), %v1500_v5  ;;  %1269 = vmatprep.mubr.msk.bf16.mxu1 (!%p315_p9), %vm1501_vm1, %v1500_v5  ;;  %v1202_v16 = vld [vmem:[%s1833_s2] ss:$0 sm:$0xff] (!%p315_p9)  ;;  %s1502_s27 = smov (!%p315_p9), 64   ;;  %vm454_vm2 = vcmask (!%p315_p9), 64512   ;;  %vm518_vm3 = vcmask (!%p315_p9), 1043456  }
   0xf   : > { %1266 = vmatpush3.bf16.msra.mxu1 (!%p315_p9), %v1404_v4  ;;  %1291 = vmatprep.subr.bf16.mxu0 (!%p315_p9), %v1500_v5  ;;  %v1203_v18 = vld [vmem:[%s1834_s3] ss:$0 sm:$0xff] (!%p315_p9)  ;;  %s1503_s28 = smov (!%p315_p9), 96   ;;  %s1505_s30 = smov (!%p315_p9), 88   ;;  %vm905_vm4 = vcmask (!%p315_p9), 130048   ;;  %vm907_vm5 = vcmask (!%p315_p9), 195584  }
  0x10   : > { %1267 = vmatprep.subr.bf16.mxu1 (!%p315_p9), %v1500_v5  ;;  %1293 = vmatprep.mubr.msk.bf16.mxu0 (!%p315_p9), %vm1501_vm1, %v1500_v5  ;;  %s1506_s11 = smov (!%p315_p9), 120   ;;  %s1507_s12 = smov (!%p315_p9), 112  }
  0x11   : > { %s1508_s18 = smov (!%p315_p9), 72   ;;  %s1509_s20 = smov (!%p315_p9), 104  }
  0x12   : > { %s1510_s21 = smov (!%p315_p9), 48  }
  0x13   : > { %1268 = vmatpush3.bf16.msra.mxu1 (!%p315_p9), %v1405_v6 }
  0x14   : > { %1273 = vmatprep.subr.bf16.mxu1 (!%p315_p9), %v1500_v5 }
  0x15   : > { %s352_s25 = scalar_select %p351_p10, %s1593_s17, 1 }
  0x17   : > { %s1201_s26 = sshll.u32 %s352_s25, 3  ;;  %s1511_s25 = smov 56  }
  0x18   : > { %s354_s29 = scalar_lea.vmem %s1831_s0, %s1201_s26  ;;  %s1512_s26 = smov 40  }
  0x19   : > { %v1625_v0 = vld [vmem:[%s354_s29] sm:$0xff]  ;;  %s1504_s29 = smov 80  }
  0x1a   : > { %v360_v1 = vsel %vm359_vm0, %v1625_v0, 0.0  ;;  %v365_v2 = vmul.f32 %v1625_v0, %v1625_v0 }
  0x1b   : > { %361 = vadd.xlane.f32.xlu0 %v360_v1 }
  0x1c   : > { %v366_v3 = vsel %vm359_vm0, %v365_v2, 0.0 }
  0x1f   : > { %367 = vadd.xlane.f32.xlu0 %v366_v3 }
  0xa8   : > { %v362_v7 = vpop.xlane.xlu0 %361 }
  0xa9   : > { %v364_v8 = vmul.f32 0.03125, %v362_v7 }
  0xab   : > { %v370_v10 = vmul.f32 %v364_v8, %v364_v8  ;;  %v374_v14 = vsub.f32 %v1625_v0, %v364_v8 }
  0xac   : > { %v368_v9 = vpop.xlane.xlu0 %367 }
  0xad   : > { %v369_v11 = vmul.f32 0.03125, %v368_v9 }
  0xaf   : > { %v371_v12 = vsub.f32 %v369_v11, %v370_v10 }
  0xb1   : > { %v372_v13 = vadd.f32 1e-05, %v371_v12 }
  0xb3   : > { %1416 = vrsqrt.f32 %v372_v13 }
  0xbd   : > { %v1417_v15 = vpop.eup %1416 }
  0xbe   : > { %v375_v17 = vmul.f32 %v1417_v15, %v374_v14 }
  0xc0   : > { %v382_v19 = vmul.f32 %v1202_v16, %v375_v17 }
  0xc2   : > { %v389_v20 = vadd.f32 %v1203_v18, %v382_v19 }
  0xc4   : > { %v390_v21 = vpack.c.bf16 %v389_v20, %v389_v20 }
  0xc6   : > { %1270 = vmatmul.mubr.msk.bf16.vlgmr.msra.gmra.mrb[0].mxu1 %vm359_vm0, %v390_v21 }
  0xc7   : > { %1275 = vmatprep.mubr.msk.bf16.mxu1 %vm1501_vm1, %v1500_v5 }
 0x199   : > { %v444_v22 = vpop.f32.mrb[0].mxu1 }
 0x19a   : > { %v1656_v23 = vpack.c.bf16 %v444_v22, %v444_v22  ;;  %v1271_v24 = vpop.f32.mrb[1].mxu1 }
 0x19b   : > { %v447_v25 = vpop.f32.mrb[2].mxu1 }
 0x19c   : > { %513 = vrot.lane.b32.xlu0 %v1656_v23, %s1502_s27  ;;  %452 = vrot.lane.b32.xlu1 %v1656_v23, %s1503_s28  ;;  %v1272_v26 = vpop.f32.mrb[3].mxu1  ;;  %s1513_s27 = smov 8   ;;  %s1514_s28 = smov 16  }
 0x20e   : > { %v453_v27 = vpop.permute.xlu1 %452  ;;  %v514_v29 = vpop.permute.xlu0 %513 }
 0x20f   : > { %v459_v28 = vsel %vm454_vm2, %v453_v27, 0  ;;  %v520_v30 = vsel %vm518_vm3, %v514_v29, 0 }
 0x210   : > { %1274 = vmatpush3.bf16.xpose.msra.mxu1 %v459_v28 }
 0x211   : > { %1279 = vmatprep.subr.bf16.mxu1 %v1500_v5 }
 0x217   : > { %1276 = vmatmul.mubr.msk.bf16.vlgmr.msra.gmra.mrb[4].mxu1 %vm454_vm2, %v1656_v23 }
 0x218   : > { %1280 = vmatpush3.bf16.msra.mxu1 %v520_v30  ;;  %1281 = vmatprep.mubr.msk.bf16.mxu1 %vm1501_vm1, %v1500_v5 }
 0x219   : > { %1285 = vmatprep.subr.bf16.mxu1 %v1500_v5 }
 0x2ea   : > { %v495_v31 = vpop.f32.mrb[4].mxu1 }
 0x2eb   : > { %v1277_v32 = vpop.f32.mrb[5].mxu1  ;;  %v501_v33 = vsel %vm454_vm2, %v495_v31, -inf }
 0x2ec   : > { %502 = vmax.xlane.f32.xlu1 %v501_v33  ;;  %v498_v34 = vpop.f32.mrb[6].mxu1 }
 0x2ed   : > { %v1278_v35 = vpop.f32.mrb[7].mxu1 }
 0x2fd   : > { %674 = vrot.lane.b32.xlu1 %v1656_v23, %s1504_s29  ;;  %s1515_s29 = smov 24  }
 0x379   : > { %v503_v36 = vpop.xlane.xlu1 %502 }
 0x37a   : > { %v504_v37 = vsub.f32 %v495_v31, %v503_v36 }
 0x37c   : > { %v505_v38 = vmul.f32 1.442695, %v504_v37 }
 0x37d   : > { %v675_v48 = vpop.permute.xlu1 %674 }
 0x37e   : > { %1418 = vpow2.f32 %v505_v38  ;;  %v680_v50 = vsel %vm454_vm2, %v675_v48, 0 }
 0x388   : > { %v1419_v39 = vpop.eup %1418 }
 0x389   : > { %v507_v40 = vsel %vm454_vm2, %v1419_v39, 0.0 }
 0x38a   : > { %508 = vadd.xlane.f32.xlu0 %v507_v40 }
 0x3a0   : > { %564 = vrot.lane.b32.xlu0 %v1656_v23, %s1505_s30 }
 0x3a4   : > { %562 = vrot.lane.b32.xlu0 %v1656_v23, %s1506_s11 }
 0x3a8   : > { %672 = vrot.lane.b32.xlu0 %v1656_v23, %s1507_s12 }
 0x3ac   : > { %784 = vrot.lane.b32.xlu0 %v1656_v23, %s1508_s18 }
 0x3b0   : > { %782 = vrot.lane.b32.xlu0 %v1656_v23, %s1509_s20  ;;  %s348_s20 = sand.u32 1, %s1490_s14  }
 0x417   : > { %v509_v41 = vpop.xlane.xlu0 %508 }
 0x418   : > { %1420 = vrcp.f32 %v509_v41 }
 0x41b   : > { %v565_v43 = vpop.permute.xlu0 %564 }
 0x41c   : > { %v570_v46 = vsel %vm454_vm2, %v565_v43, 0 }
 0x41f   : > { %v563_v47 = vpop.permute.xlu0 %562 }
 0x422   : > { %v1421_v42 = vpop.eup %1420 }
 0x423   : > { %v511_v44 = vmul.f32 %v1421_v42, %v1419_v39  ;;  %v673_v49 = vpop.permute.xlu0 %672 }
 0x425   : > { %v512_v45 = vpack.c.bf16 %v511_v44, %v511_v44 }
 0x427   : > { %1282 = vmatmul.mubr.msk.bf16.vlgmr.msra.gmra.mrb[8].mxu1 %vm454_vm2, %v512_v45  ;;  %v785_v51 = vpop.permute.xlu0 %784 }
 0x428   : > { %1286 = vmatpush3.bf16.xpose.msra.mxu1 %v570_v46  ;;  %1287 = vmatprep.mubr.msk.bf16.mxu1 %vm1501_vm1, %v1500_v5  ;;  %v790_v52 = vsel %vm454_vm2, %v785_v51, 0 }
 0x429   : > { %1297 = vmatprep.subr.bf16.mxu1 %v1500_v5 }
 0x42b   : > { %v783_v53 = vpop.permute.xlu0 %782 }
 0x42f   : > { %1288 = vmatmul.mubr.msk.bf16.vlgmr.msra.gmra.mrb[12].mxu1 %vm454_vm2, %v563_v47 }
 0x430   : > { %1298 = vmatpush3.bf16.xpose.msra.mxu1 %v680_v50  ;;  %1299 = vmatprep.mubr.msk.bf16.mxu1 %vm1501_vm1, %v1500_v5 }
 0x431   : > { %1309 = vmatprep.subr.bf16.mxu1 %v1500_v5 }
 0x437   : > { %1300 = vmatmul.mubr.msk.bf16.vlgmr.msra.gmra.mrb[16].mxu1 %vm454_vm2, %v673_v49 }
 0x438   : > { %1310 = vmatpush3.bf16.xpose.msra.mxu1 %v790_v52  ;;  %1311 = vmatprep.mubr.msk.bf16.mxu1 %vm1501_vm1, %v1500_v5 }
 0x439   : > { %1321 = vmatprep.subr.bf16.mxu1 %v1500_v5 }
 0x43f   : > { %1312 = vmatmul.mubr.msk.bf16.vlgmr.msra.gmra.mrb[20].mxu1 %vm454_vm2, %v783_v53 }
 0x440   : > { %1325 = vmatprep.mubr.msk.bf16.mxu1 %vm1501_vm1, %v1500_v5 }
 0x4fa   : > { %v1694_v54 = vpop.f32.mrb[8].mxu1 }
 0x4fb   : > { %v1283_v55 = vpop.f32.mrb[9].mxu1 }
 0x4fc   : > { %v559_v56 = vpop.f32.mrb[10].mxu1 }
 0x4fd   : > { %v1284_v57 = vpop.f32.mrb[11].mxu1 }
 0x502   : > { %v606_v58 = vpop.f32.mrb[12].mxu1 }
 0x503   : > { %v1289_v59 = vpop.f32.mrb[13].mxu1  ;;  %v612_v60 = vsel %vm454_vm2, %v606_v58, -inf }
 0x504   : > { %613 = vmax.xlane.f32.xlu0 %v612_v60  ;;  %v609_v61 = vpop.f32.mrb[14].mxu1 }
 0x505   : > { %v1290_v62 = vpop.f32.mrb[15].mxu1 }
 0x50a   : > { %v716_v63 = vpop.f32.mrb[16].mxu1 }
 0x50b   : > { %v1301_v1 = vpop.f32.mrb[17].mxu1  ;;  %v722_v2 = vsel %vm454_vm2, %v716_v63, -inf }
 0x50c   : > { %723 = vmax.xlane.f32.xlu1 %v722_v2  ;;  %v719_v3 = vpop.f32.mrb[18].mxu1 }
 0x50d   : > { %v1302_v4 = vpop.f32.mrb[19].mxu1 }
 0x50e   : > { %v1408_v4 = vld [vmem:[%s1839_s8] sm:$0xff]  }
 0x512   : > { %v826_v6 = vpop.f32.mrb[20].mxu1 }
 0x513   : > { %v1313_v7 = vpop.f32.mrb[21].mxu1  ;;  %v832_v8 = vsel %vm454_vm2, %v826_v6, -inf }
 0x514   : > { %833 = vmax.xlane.f32.xlu0 %v832_v8  ;;  %v829_v9 = vpop.f32.mrb[22].mxu1  ;;  %v1410_v7 = vld [vmem:[%s1839_s8 + $0x10] sm:$0xff]   ;;  %v1411_v8 = vld [vmem:[%s1839_s8 + $0x18] sm:$0xff]  }
 0x515   : > { %v1314_v10 = vpop.f32.mrb[23].mxu1  ;;  %v1412_v9 = vld [vmem:[%s1839_s8 + $0x20] sm:$0xff]  }
 0x516   : > { %v1413_v10 = vld [vmem:[%s1839_s8 + $0x28] sm:$0xff]  }
 0x51d   : > { %734 = vrot.lane.b32.xlu1 %v1656_v23, %s1510_s21  ;;  %s1200_s21 = sshll.u32 %s348_s20, 3 }
 0x591   : > { %v614_v11 = vpop.xlane.xlu0 %613 }
 0x592   : > { %v615_v12 = vsub.f32 %v606_v58, %v614_v11 }
 0x594   : > { %v616_v13 = vmul.f32 1.442695, %v615_v12 }
 0x596   : > { %1422 = vpow2.f32 %v616_v13 }
 0x599   : > { %v724_v14 = vpop.xlane.xlu1 %723 }
 0x59a   : > { %v725_v15 = vsub.f32 %v716_v63, %v724_v14 }
 0x59c   : > { %v726_v16 = vmul.f32 1.442695, %v725_v15 }
 0x59d   : > { %v735_v30 = vpop.permute.xlu1 %734 }
 0x59e   : > { %1424 = vpow2.f32 %v726_v16  ;;  %v740_v36 = vsel %vm518_vm3, %v735_v30, 0 }
 0x5a0   : > { %v1423_v17 = vpop.eup %1422 }
 0x5a1   : > { %v834_v18 = vpop.xlane.xlu0 %833  ;;  %v618_v19 = vsel %vm454_vm2, %v1423_v17, 0.0 }
 0x5a2   : > { %v835_v20 = vsub.f32 %v826_v6, %v834_v18  ;;  %619 = vadd.xlane.f32.xlu0 %v618_v19  ;;  %v1409_v6 = vld [vmem:[%s1839_s8 + $0x8] sm:$0xff]  }
 0x5a4   : > { %v836_v21 = vmul.f32 1.442695, %v835_v20  ;;  %v1215_v20 = vld [vmem:[%s1835_s4] ss:$0 sm:$0xff] }
 0x5a6   : > { %1426 = vpow2.f32 %v836_v21 }
 0x5a8   : > { %v1425_v22 = vpop.eup %1424 }
 0x5a9   : > { %v728_v24 = vsel %vm454_vm2, %v1425_v22, 0.0 }
 0x5aa   : > { %729 = vadd.xlane.f32.xlu0 %v728_v24 }
 0x5b0   : > { %v1427_v25 = vpop.eup %1426 }
 0x5b1   : > { %v838_v26 = vsel %vm454_vm2, %v1427_v25, 0.0 }
 0x5b2   : > { %839 = vadd.xlane.f32.xlu1 %v838_v26 }
 0x5c0   : > { %624 = vrot.lane.b32.xlu0 %v1656_v23, %s1511_s25 }
 0x5c3   : > { %844 = vrot.lane.b32.xlu1 %v1656_v23, %s1512_s26 }
 0x62f   : > { %v620_v27 = vpop.xlane.xlu0 %619 }
 0x630   : > { %1428 = vrcp.f32 %v620_v27  ;;  %v1414_v27 = vld [vmem:[%s1839_s8 + $0x30] sm:$0xff]  }
 0x637   : > { %v730_v28 = vpop.xlane.xlu0 %729 }
 0x638   : > { %1430 = vrcp.f32 %v730_v28  ;;  %v1415_v28 = vld [vmem:[%s1839_s8 + $0x38] sm:$0xff]  }
 0x63a   : > { %v1429_v29 = vpop.eup %1428 }
 0x63b   : > { %v625_v31 = vpop.permute.xlu0 %624  ;;  %v622_v32 = vmul.f32 %v1429_v29, %v1423_v17  ;;  %v1217_v29 = vld [vmem:[%s1838_s7] ss:$0 sm:$0xff] }
 0x63c   : > { %v630_v33 = vsel %vm518_vm3, %v625_v31, 0 }
 0x63d   : > { %1292 = vmatpush3.bf16.msra.mxu0 %v630_v33  ;;  %v623_v34 = vpack.c.bf16 %v622_v32, %v622_v32 }
 0x63e   : > { %1303 = vmatprep.subr.bf16.mxu0 %v1500_v5 }
 0x63f   : > { %v840_v35 = vpop.xlane.xlu1 %839 }
 0x640   : > { %1432 = vrcp.f32 %v840_v35  ;;  %1294 = vmatmul.mubr.msk.bf16.vlgmr.msra.gmra.mrb[0].mxu0 %vm454_vm2, %v623_v34 }
 0x641   : > { %1304 = vmatpush3.bf16.msra.mxu0 %v740_v36  ;;  %1305 = vmatprep.mubr.msk.bf16.mxu0 %vm1501_vm1, %v1500_v5 }
 0x642   : > { %v1431_v23 = vpop.eup %1430  ;;  %1315 = vmatprep.subr.bf16.mxu0 %v1500_v5 }
 0x643   : > { %v732_v37 = vmul.f32 %v1431_v23, %v1425_v22  ;;  %v845_v38 = vpop.permute.xlu1 %844  ;;  %v1216_v22 = vld [vmem:[%s1836_s5] ss:$0 sm:$0xff] }
 0x644   : > { %v850_v40 = vsel %vm518_vm3, %v845_v38, 0 }
 0x645   : > { %v733_v39 = vpack.c.bf16 %v732_v37, %v732_v37 }
 0x648   : > { %1306 = vmatmul.mubr.msk.bf16.vlgmr.msra.gmra.mrb[4].mxu0 %vm454_vm2, %v733_v39 }
 0x649   : > { %1316 = vmatpush3.bf16.msra.mxu0 %v850_v40  ;;  %1317 = vmatprep.mubr.msk.bf16.mxu0 %vm1501_vm1, %v1500_v5 }
 0x64a   : > { %v1433_v41 = vpop.eup %1432  ;;  %1329 = vmatprep.subr.bf16.mxu0 %v1500_v5 }
 0x64b   : > { %v842_v42 = vmul.f32 %v1433_v41, %v1427_v25 }
 0x64d   : > { %v843_v43 = vpack.c.bf16 %v842_v42, %v842_v42 }
 0x650   : > { %1318 = vmatmul.mubr.msk.bf16.vlgmr.msra.gmra.mrb[8].mxu0 %vm454_vm2, %v843_v43 }
 0x651   : > { %1345 = vmatprep.mubr.msk.bf16.mxu0 %vm1501_vm1, %v1500_v5  ;;  %1330 = vmatpush3.bf16.msra.mxu0 %v1408_v4 }
 0x652   : > { %1331 = vmatprep.subr.bf16.mxu0 %v1500_v5 }
 0x655   : > { %1332 = vmatpush3.bf16.msra.mxu0 %v1409_v6 }
 0x656   : > { %1333 = vmatprep.subr.bf16.mxu0 %v1500_v5 }
 0x659   : > { %1334 = vmatpush3.bf16.msra.mxu0 %v1410_v7 }
 0x65a   : > { %1335 = vmatprep.subr.bf16.mxu0 %v1500_v5 }
 0x65d   : > { %1336 = vmatpush3.bf16.msra.mxu0 %v1411_v8 }
 0x65e   : > { %1337 = vmatprep.subr.bf16.mxu0 %v1500_v5 }
 0x661   : > { %1338 = vmatpush3.bf16.msra.mxu0 %v1412_v9 }
 0x662   : > { %1339 = vmatprep.subr.bf16.mxu0 %v1500_v5 }
 0x665   : > { %1340 = vmatpush3.bf16.msra.mxu0 %v1413_v10 }
 0x666   : > { %1341 = vmatprep.subr.bf16.mxu0 %v1500_v5 }
 0x669   : > { %1342 = vmatpush3.bf16.msra.mxu0 %v1414_v27 }
 0x66a   : > { %1343 = vmatprep.subr.bf16.mxu0 %v1500_v5 }
 0x66d   : > { %1344 = vmatpush3.bf16.msra.mxu0 %v1415_v28 }
 0x713   : > { %v666_v44 = vpop.f32.mrb[0].mxu0 }
 0x714   : > { %893 = vrot.lane.b32.xlu1 %v666_v44, %s1513_s27  ;;  %v1295_v45 = vpop.f32.mrb[1].mxu0  ;;  %s1231_s27 = sshll.u32 %s1593_s17, 7  ;;  %s1124_s17 = scalar_lea.sflag [#allocation3], %s348_s20 }
 0x715   : > { %v669_v46 = vpop.f32.mrb[2].mxu0  ;;  %s1788_s12 = scalar_lea.hbm %s1841_s10, %s1231_s27 }
 0x716   : > { %v1296_v47 = vpop.f32.mrb[3].mxu0 }
 0x71b   : > { %v776_v48 = vpop.f32.mrb[4].mxu0 }
 0x71c   : > { %897 = vrot.lane.b32.xlu0 %v776_v48, %s1514_s28  ;;  %v1307_v49 = vpop.f32.mrb[5].mxu0  ;;  %s350_s28 = scalar_lea.vmem [#allocation2], %s1200_s21  ;;  %s1516_s21 = smov [#allocation2]  }
 0x71d   : > { %v779_v50 = vpop.f32.mrb[6].mxu0  ;;  %s1440_s25 = sshll.u32 %s1516_s21, 4  ;;  %s1441_s25 = int_to_ptr.vmem [resolvable:$false] %s1440_s25 }
 0x71e   : > { %v1308_v51 = vpop.f32.mrb[7].mxu0  ;;  %s1442_s26 = scalar_lea.vmem %s1441_s25, 256 }
 0x723   : > { %v886_v52 = vpop.f32.mrb[8].mxu0 }
 0x724   : > { %901 = vrot.lane.b32.xlu1 %v886_v52, %s1515_s29  ;;  %v1319_v53 = vpop.f32.mrb[9].mxu0  ;;  %s1137_s29 = sshll.u32 %s350_s28, 4  ;;  %s1790_s29 = int_to_ptr.vmem [resolvable:$true] %s1137_s29 }
 0x725   : > { %v889_v55 = vpop.f32.mrb[10].mxu0  ;;  %s1436_s18 = scalar_lea.vmem %s1790_s29, 128  ;;  %p1443_p0 = scmp.lt.s32.totalorder %s1790_s29, %s1441_s25 }
 0x726   : > { %v1320_v56 = vpop.f32.mrb[11].mxu0  ;;  %p1437_p11 = scmp.ne.s32.totalorder %s1790_s29, %s1436_s18  ;;  %p1444_p1 = scmp.lt.s32.totalorder %s1442_s26, %s1436_s18 }
 0x728   : > { %p1438_p12 = pnand %p1437_p11, %p1610_p5  ;;  %p1445_p2 = por %p1444_p1, %p1443_p0 }
 0x72a   : > { %p1439_p13 = pneg %p1438_p12 }
 0x72c   : > { %p1446_p3 = pnand %p1445_p2, %p1439_p13 }
 0x786   : > { %v894_v57 = vpop.permute.xlu1 %893 }
 0x787   : > { %v904_v59 = vsel %vm454_vm2, %v1694_v54, %v894_v57  ;;  %v1406_v54 = vld [vmem:[%s1837_s6] sm:$0xff]  }
 0x788   : > { %1322 = vmatpush3.bf16.msra.mxu1 %v1406_v54 }
 0x789   : > { %1323 = vmatprep.subr.bf16.mxu1 %v1500_v5  ;;  %v1221_v5 = vld [vmem:[%s1840_s9] ss:$0 sm:$0xff] }
 0x78e   : > { %v898_v58 = vpop.permute.xlu0 %897 }
 0x78f   : > { %v906_v60 = vsel %vm905_vm4, %v904_v59, %v898_v58 }
 0x796   : > { %v902_v61 = vpop.permute.xlu1 %901 }
 0x797   : > { %v908_v62 = vsel %vm907_vm5, %v906_v60, %v902_v61 }
 0x798   : > { %v1723_v63 = vadd.f32 %v908_v62, %v1625_v0  ;;  %v1407_v0 = vld [vmem:[%s1837_s6 + $0x8] sm:$0xff]  }
 0x799   : > { %1324 = vmatpush3.bf16.msra.mxu1 %v1407_v0 }
 0x79a   : > { %v912_v1 = vsel %vm359_vm0, %v1723_v63, 0.0  ;;  %v916_v2 = vmul.f32 %v1723_v63, %v1723_v63 }
 0x79b   : > { %913 = vadd.xlane.f32.xlu0 %v912_v1 }
 0x79c   : > { %v917_v3 = vsel %vm359_vm0, %v916_v2, 0.0 }
 0x79d   : > { %918 = vadd.xlane.f32.xlu1 %v917_v3 }
 0x828   : > { %v914_v11 = vpop.xlane.xlu0 %913 }
 0x829   : > { %v915_v12 = vmul.f32 0.03125, %v914_v11 }
 0x82a   : > { %v919_v13 = vpop.xlane.xlu1 %918 }
 0x82b   : > { %v921_v14 = vmul.f32 %v915_v12, %v915_v12  ;;  %v920_v15 = vmul.f32 0.03125, %v919_v13  ;;  %v925_v18 = vsub.f32 %v1723_v63, %v915_v12 }
 0x82d   : > { %v922_v16 = vsub.f32 %v920_v15, %v921_v14 }
 0x82f   : > { %v923_v17 = vadd.f32 1e-05, %v922_v16 }
 0x831   : > { %1434 = vrsqrt.f32 %v923_v17 }
 0x83b   : > { %v1435_v19 = vpop.eup %1434 }
 0x83c   : > { %v926_v21 = vmul.f32 %v1435_v19, %v925_v18 }
 0x83e   : > { %v933_v24 = vmul.f32 %v1215_v20, %v926_v21 }
 0x840   : > { %v940_v25 = vadd.f32 %v1216_v22, %v933_v24 }
 0x842   : > { %v941_v26 = vpack.c.bf16 %v940_v25, %v940_v25 }
 0x844   : > { %1326 = vmatmul.mubr.msk.bf16.vlgmr.msra.gmra.mrb[24].mxu1 %vm359_vm0, %v941_v26 }
 0x917   : > { %v1002_v30 = vpop.f32.mrb[24].mxu1 }
 0x918   : > { %v1003_v31 = vadd.f32 %v1217_v29, %v1002_v30  ;;  %v1327_v32 = vpop.f32.mrb[25].mxu1 }
 0x919   : > { %v1005_v33 = vpop.f32.mrb[26].mxu1 }
 0x91a   : > { %v1008_v34 = vmax.f32 %v1003_v31, 0.0  ;;  %v1328_v35 = vpop.f32.mrb[27].mxu1 }
 0x91c   : > { %v1009_v36 = vpack.c.bf16 %v1008_v34, %v1008_v34 }
 0x91e   : > { %1346 = vmatmul.mubr.bf16.vlgmr.msra.gmra.mrb[12].mxu0 %v1009_v36 }
 0x9f1   : > { %v1115_v23 = vpop.f32.mrb[12].mxu0 }
 0x9f2   : > { %v1116_v37 = vadd.f32 %v1221_v5, %v1115_v23  ;;  %v1347_v38 = vpop.f32.mrb[13].mxu0 }
 0x9f3   : > { %v1118_v39 = vpop.f32.mrb[14].mxu0 }
 0x9f4   : > { %v1121_v40 = vadd.f32 %v1116_v37, %v1723_v63  ;;  %v1348_v41 = vpop.f32.mrb[15].mxu0 }
 0x9f6   : > { %1122 = vst.msk [vmem:[%s350_s28] sm:$0xff] %vm359_vm0, %v1121_v40 }
 0x9f7   : > { %1449 = shalt.err (!%p1446_p3)
}
 0x9f8   : > { %s1450_s20 = scalar_lea.hbm %s1788_s12, 128  ;;  %s1454_s30 = scalar_lea.hbm %s1841_s10, 256 }
 0x9f9   : > { %p1451_p4 = scmp.ne.s32.totalorder %s1788_s12, %s1450_s20  ;;  %p1455_p9 = scmp.lt.u32.totalorder %s1788_s12, %s1841_s10 }
 0x9fa   : > { %p1456_p10 = scmp.lt.u32.totalorder %s1454_s30, %s1450_s20  ;;  %p1458_p12 = scmp.lt.u32.totalorder %s1450_s20, %s1788_s12 }
 0x9fb   : > { %p1452_p7 = pnand %p1451_p4, %p1610_p5 }
 0x9fc   : > { %p1457_p11 = por %p1456_p10, %p1455_p9 }
 0x9fd   : > { %p1453_p8 = pneg %p1452_p7 }
 0x9fe   : > { %p1459_p13 = por %p1458_p12, %p1457_p11 }
 0xa00   : > { %p1460_p0 = pnand %p1459_p13, %p1453_p8 }
 0xa02   : > { %1463 = shalt.err (!%p1460_p0)
}
 0xa03   : > { %1349 = dma.vmem_to_hbm [thread:$0]  (%p1610_p5), %s1790_s29, 128, %s1788_s12, %s1124_s17  }
 0xa04 PF: > { %p1355_p1 = scmp.ge.s32.totalorder %s1498_s16, 2  ;;  %s1149_s18 = sand.u32 1, %s1486_s13  }
 0xa05   : > { %s1150_s25 = scalar_lea.sflag [#allocation3], %s1149_s18 }
 0xa06   : > { %p1352_p2 = pnand %p1355_p1, %p1614_p6 }
 0xa08   : > { %1481 = dma.done.wait (!%p1352_p2), %s1150_s25, 128  }
 0xa09   : > { %1483 = vsyncadd (!%p1352_p2), %s1150_s25, 4294967168  ;;  %p20_p3 = scmp.ge.s32.totalorder %s1597_s19, 4   ;;  %s1844_s13 = smov %s1490_s14 }
 0xa0a   : > { %s1845_s14 = smov %s1494_s15  ;;  %s1846_s15 = smov %s1608_s22 }
 0xa0b   : > { %s1847_s16 = smov %s1597_s19  ;;  %22 = sbr.rel (!%p20_p3) target bundleno = 3 (0x3), region = 95 }
 0xa12   :  { %1155 = vsyncpa [#allocation3], 1 }
 0xa13   :  { %1157 = vsyncpa [#allocation3 + $0x1], 1 }

// kernel: tpu_custom_call.1
= control target key start
LH: loop header
LB: loop body
LE: loop exit
PB: predicated region body
PF: predicated region fallthrough
CT: control target
= control target key end

     0   :  { %15 = vsyncpa [#allocation3], 0  ;;  %s1831_s0 = inlined_call_operand.vmem [shape: f32[2,8,32], index: 0, kind: input, shape index: {}]   ;;  %s1832_s1 = inlined_call_operand.vmem [shape: bf16[32,96], index: 1, kind: input, shape index: {}]   ;;  %s1833_s2 = inlined_call_operand.vmem [shape: f32[1,32], index: 2, kind: input, shape index: {}]   ;;  %s1834_s3 = inlined_call_operand.vmem [shape: f32[1,32], index: 3, kind: input, shape index: {}]   ;;  %s1835_s4 = inlined_call_operand.vmem [shape: f32[1,32], index: 4, kind: input, shape index: {}]   ;;  %s1836_s5 = inlined_call_operand.vmem [shape: f32[1,32], index: 5, kind: input, shape index: {}]   ;;  %s1837_s6 = inlined_call_operand.vmem [shape: bf16[32,128], index: 6, kind: input, shape index: {}]   ;;  %s1838_s7 = inlined_call_operand.vmem [shape: f32[1,128], index: 7, kind: input, shape index: {}]   ;;  %s1839_s8 = inlined_call_operand.vmem [shape: bf16[128,32], index: 8, kind: input, shape index: {}]   ;;  %s1840_s9 = inlined_call_operand.vmem [shape: f32[1,32], index: 9, kind: input, shape index: {}]   ;;  %s1841_s10 = inlined_call_operand.hbm [shape: f32[2,8,32], index: 10, kind: output, shape index: {}]  }
   0x1   :  { %17 = vsyncpa [#allocation3 + $0x1], 0  ;;  %s1572_s13 = smov 0   ;;  %s1574_s14 = smov 0  }
   0x2   :  { %s1576_s15 = smov 0   ;;  %s1578_s16 = smov 0  }
   0x3 LB: > { %s1593_s17 = sadd.s32 4294967295, %s1498_s16   ;;  %s1196_s18 = sadd.s32 4294967294, %s1498_s16   ;;  %s1498_s16 = sphi %s1578_s16, %s1847_s16   ;;  %s1494_s15 = sphi %s1576_s15, %s1846_s15   ;;  %s1490_s14 = sphi %s1574_s14, %s1845_s14   ;;  %s1486_s13 = sphi %s1572_s13, %s1844_s13  }
   0x4   : > { %s1597_s19 = sadd.s32 1, %s1498_s16   ;;  %s245_s20 = sadd.s32 1, %s1494_s15 }
   0x5   : > { %s242_s21 = ssub.s32 %s1498_s16, %s1597_s19  ;;  %p255_p0 = scmp.ne.s32.totalorder %s1494_s15, %s1490_s14 }
   0x6   : > { %p243_p1 = scmp.eq.s32.totalorder %s242_s21, 0  ;;  %p256_p2 = scmp.eq.s32.totalorder %s1593_s17, 1 }
   0x7   : > { %p261_p3 = scmp.ne.s32.totalorder %s1490_s14, %s1486_s13  ;;  %p262_p4 = scmp.eq.s32.totalorder %s1196_s18, 1 }
   0x8   : > { %s1608_s22 = scalar_select %p243_p1, %s1494_s15, %s245_s20  }
   0x9   : > { %p1610_p5 = por %p256_p2, %p255_p0  ;;  %p1614_p6 = por %p262_p4, %p261_p3 }
   0xa   : > { %p1199_p7 = scmp.ge.s32.totalorder %s1498_s16, 1  ;;  %p314_p8 = scmp.lt.s32.totalorder %s1498_s16, 3 }
   0xc   : > { %p315_p9 = pnand %p1199_p7, %p314_p8 }
   0xd   : > { %p351_p10 = scmp.lt.s32.totalorder (!%p315_p9), %s1593_s17, 1  ;;  %vm359_vm0 = vcmask (!%p315_p9), 261120   ;;  %v1404_v4 = vld [vmem:[%s1832_s1] sm:$0xff] (!%p315_p9)   ;;  %v1500_v5 = vmov (!%p315_p9), 0.0   ;;  %vm1501_vm1 = vmmov (!%p315_p9), 0   ;;  %v1405_v6 = vld [vmem:[%s1832_s1 + $0x8] sm:$0xff] (!%p315_p9)  }
   0xe   : > { %318 = sbr.rel (%p315_p9) target bundleno = 2564 (0xa04), region = 60  ;;  %1265 = vmatprep.subr.bf16.mxu1 (!%p315_p9), %v1500_v5  ;;  %1269 = vmatprep.mubr.msk.bf16.mxu1 (!%p315_p9), %vm1501_vm1, %v1500_v5  ;;  %v1202_v16 = vld [vmem:[%s1833_s2] ss:$0 sm:$0xff] (!%p315_p9)  ;;  %s1502_s27 = smov (!%p315_p9), 64   ;;  %vm454_vm2 = vcmask (!%p315_p9), 64512   ;;  %vm518_vm3 = vcmask (!%p315_p9), 1043456  }
   0xf   : > { %1266 = vmatpush3.bf16.msra.mxu1 (!%p315_p9), %v1404_v4  ;;  %1291 = vmatprep.subr.bf16.mxu0 (!%p315_p9), %v1500_v5  ;;  %v1203_v18 = vld [vmem:[%s1834_s3] ss:$0 sm:$0xff] (!%p315_p9)  ;;  %s1503_s28 = smov (!%p315_p9), 96   ;;  %s1505_s30 = smov (!%p315_p9), 88   ;;  %vm905_vm4 = vcmask (!%p315_p9), 130048   ;;  %vm907_vm5 = vcmask (!%p315_p9), 195584  }
  0x10   : > { %1267 = vmatprep.subr.bf16.mxu1 (!%p315_p9), %v1500_v5  ;;  %1293 = vmatprep.mubr.msk.bf16.mxu0 (!%p315_p9), %vm1501_vm1, %v1500_v5  ;;  %s1506_s11 = smov (!%p315_p9), 120   ;;  %s1507_s12 = smov (!%p315_p9), 112  }
  0x11   : > { %s1508_s18 = smov (!%p315_p9), 72   ;;  %s1509_s20 = smov (!%p315_p9), 104  }
  0x12   : > { %s1510_s21 = smov (!%p315_p9), 48  }
  0x13   : > { %1268 = vmatpush3.bf16.msra.mxu1 (!%p315_p9), %v1405_v6 }
  0x14   : > { %1273 = vmatprep.subr.bf16.mxu1 (!%p315_p9), %v1500_v5 }
  0x15   : > { %s352_s25 = scalar_select %p351_p10, %s1593_s17, 1 }
  0x17   : > { %s1201_s26 = sshll.u32 %s352_s25, 3  ;;  %s1511_s25 = smov 56  }
  0x18   : > { %s354_s29 = scalar_lea.vmem %s1831_s0, %s1201_s26  ;;  %s1512_s26 = smov 40  }
  0x19   : > { %v1625_v0 = vld [vmem:[%s354_s29] sm:$0xff]  ;;  %s1504_s29 = smov 80  }
  0x1a   : > { %v360_v1 = vsel %vm359_vm0, %v1625_v0, 0.0  ;;  %v365_v2 = vmul.f32 %v1625_v0, %v1625_v0 }
  0x1b   : > { %361 = vadd.xlane.f32.xlu0 %v360_v1 }
  0x1c   : > { %v366_v3 = vsel %vm359_vm0, %v365_v2, 0.0 }
  0x1f   : > { %367 = vadd.xlane.f32.xlu0 %v366_v3 }
  0xa8   : > { %v362_v7 = vpop.xlane.xlu0 %361 }
  0xa9   : > { %v364_v8 = vmul.f32 0.03125, %v362_v7 }
  0xab   : > { %v370_v10 = vmul.f32 %v364_v8, %v364_v8  ;;  %v374_v14 = vsub.f32 %v1625_v0, %v364_v8 }
  0xac   : > { %v368_v9 = vpop.xlane.xlu0 %367 }
  0xad   : > { %v369_v11 = vmul.f32 0.03125, %v368_v9 }
  0xaf   : > { %v371_v12 = vsub.f32 %v369_v11, %v370_v10 }
  0xb1   : > { %v372_v13 = vadd.f32 1e-05, %v371_v12 }
  0xb3   : > { %1416 = vrsqrt.f32 %v372_v13 }
  0xbd   : > { %v1417_v15 = vpop.eup %1416 }
  0xbe   : > { %v375_v17 = vmul.f32 %v1417_v15, %v374_v14 }
  0xc0   : > { %v382_v19 = vmul.f32 %v1202_v16, %v375_v17 }
  0xc2   : > { %v389_v20 = vadd.f32 %v1203_v18, %v382_v19 }
  0xc4   : > { %v390_v21 = vpack.c.bf16 %v389_v20, %v389_v20 }
  0xc6   : > { %1270 = vmatmul.mubr.msk.bf16.vlgmr.msra.gmra.mrb[0].mxu1 %vm359_vm0, %v390_v21 }
  0xc7   : > { %1275 = vmatprep.mubr.msk.bf16.mxu1 %vm1501_vm1, %v1500_v5 }
 0x199   : > { %v444_v22 = vpop.f32.mrb[0].mxu1 }
 0x19a   : > { %v1656_v23 = vpack.c.bf16 %v444_v22, %v444_v22  ;;  %v1271_v24 = vpop.f32.mrb[1].mxu1 }
 0x19b   : > { %v447_v25 = vpop.f32.mrb[2].mxu1 }
 0x19c   : > { %513 = vrot.lane.b32.xlu0 %v1656_v23, %s1502_s27  ;;  %452 = vrot.lane.b32.xlu1 %v1656_v23, %s1503_s28  ;;  %v1272_v26 = vpop.f32.mrb[3].mxu1  ;;  %s1513_s27 = smov 8   ;;  %s1514_s28 = smov 16  }
 0x20e   : > { %v453_v27 = vpop.permute.xlu1 %452  ;;  %v514_v29 = vpop.permute.xlu0 %513 }
 0x20f   : > { %v459_v28 = vsel %vm454_vm2, %v453_v27, 0  ;;  %v520_v30 = vsel %vm518_vm3, %v514_v29, 0 }
 0x210   : > { %1274 = vmatpush3.bf16.xpose.msra.mxu1 %v459_v28 }
 0x211   : > { %1279 = vmatprep.subr.bf16.mxu1 %v1500_v5 }
 0x217   : > { %1276 = vmatmul.mubr.msk.bf16.vlgmr.msra.gmra.mrb[4].mxu1 %vm454_vm2, %v1656_v23 }
 0x218   : > { %1280 = vmatpush3.bf16.msra.mxu1 %v520_v30  ;;  %1281 = vmatprep.mubr.msk.bf16.mxu1 %vm1501_vm1, %v1500_v5 }
 0x219   : > { %1285 = vmatprep.subr.bf16.mxu1 %v1500_v5 }
 0x2ea   : > { %v495_v31 = vpop.f32.mrb[4].mxu1 }
 0x2eb   : > { %v1277_v32 = vpop.f32.mrb[5].mxu1  ;;  %v501_v33 = vsel %vm454_vm2, %v495_v31, -inf }
 0x2ec   : > { %502 = vmax.xlane.f32.xlu1 %v501_v33  ;;  %v498_v34 = vpop.f32.mrb[6].mxu1 }
 0x2ed   : > { %v1278_v35 = vpop.f32.mrb[7].mxu1 }
 0x2fd   : > { %674 = vrot.lane.b32.xlu1 %v1656_v23, %s1504_s29  ;;  %s1515_s29 = smov 24  }
 0x379   : > { %v503_v36 = vpop.xlane.xlu1 %502 }
 0x37a   : > { %v504_v37 = vsub.f32 %v495_v31, %v503_v36 }
 0x37c   : > { %v505_v38 = vmul.f32 1.442695, %v504_v37 }
 0x37d   : > { %v675_v48 = vpop.permute.xlu1 %674 }
 0x37e   : > { %1418 = vpow2.f32 %v505_v38  ;;  %v680_v50 = vsel %vm454_vm2, %v675_v48, 0 }
 0x388   : > { %v1419_v39 = vpop.eup %1418 }
 0x389   : > { %v507_v40 = vsel %vm454_vm2, %v1419_v39, 0.0 }
 0x38a   : > { %508 = vadd.xlane.f32.xlu0 %v507_v40 }
 0x3a0   : > { %564 = vrot.lane.b32.xlu0 %v1656_v23, %s1505_s30 }
 0x3a4   : > { %562 = vrot.lane.b32.xlu0 %v1656_v23, %s1506_s11 }
 0x3a8   : > { %672 = vrot.lane.b32.xlu0 %v1656_v23, %s1507_s12 }
 0x3ac   : > { %784 = vrot.lane.b32.xlu0 %v1656_v23, %s1508_s18 }
 0x3b0   : > { %782 = vrot.lane.b32.xlu0 %v1656_v23, %s1509_s20  ;;  %s348_s20 = sand.u32 1, %s1490_s14  }
 0x417   : > { %v509_v41 = vpop.xlane.xlu0 %508 }
 0x418   : > { %1420 = vrcp.f32 %v509_v41 }
 0x41b   : > { %v565_v43 = vpop.permute.xlu0 %564 }
 0x41c   : > { %v570_v46 = vsel %vm454_vm2, %v565_v43, 0 }
 0x41f   : > { %v563_v47 = vpop.permute.xlu0 %562 }
 0x422   : > { %v1421_v42 = vpop.eup %1420 }
 0x423   : > { %v511_v44 = vmul.f32 %v1421_v42, %v1419_v39  ;;  %v673_v49 = vpop.permute.xlu0 %672 }
 0x425   : > { %v512_v45 = vpack.c.bf16 %v511_v44, %v511_v44 }
 0x427   : > { %1282 = vmatmul.mubr.msk.bf16.vlgmr.msra.gmra.mrb[8].mxu1 %vm454_vm2, %v512_v45  ;;  %v785_v51 = vpop.permute.xlu0 %784 }
 0x428   : > { %1286 = vmatpush3.bf16.xpose.msra.mxu1 %v570_v46  ;;  %1287 = vmatprep.mubr.msk.bf16.mxu1 %vm1501_vm1, %v1500_v5  ;;  %v790_v52 = vsel %vm454_vm2, %v785_v51, 0 }
 0x429   : > { %1297 = vmatprep.subr.bf16.mxu1 %v1500_v5 }
 0x42b   : > { %v783_v53 = vpop.permute.xlu0 %782 }
 0x42f   : > { %1288 = vmatmul.mubr.msk.bf16.vlgmr.msra.gmra.mrb[12].mxu1 %vm454_vm2, %v563_v47 }
 0x430   : > { %1298 = vmatpush3.bf16.xpose.msra.mxu1 %v680_v50  ;;  %1299 = vmatprep.mubr.msk.bf16.mxu1 %vm1501_vm1, %v1500_v5 }
 0x431   : > { %1309 = vmatprep.subr.bf16.mxu1 %v1500_v5 }
 0x437   : > { %1300 = vmatmul.mubr.msk.bf16.vlgmr.msra.gmra.mrb[16].mxu1 %vm454_vm2, %v673_v49 }
 0x438   : > { %1310 = vmatpush3.bf16.xpose.msra.mxu1 %v790_v52  ;;  %1311 = vmatprep.mubr.msk.bf16.mxu1 %vm1501_vm1, %v1500_v5 }
 0x439   : > { %1321 = vmatprep.subr.bf16.mxu1 %v1500_v5 }
 0x43f   : > { %1312 = vmatmul.mubr.msk.bf16.vlgmr.msra.gmra.mrb[20].mxu1 %vm454_vm2, %v783_v53 }
 0x440   : > { %1325 = vmatprep.mubr.msk.bf16.mxu1 %vm1501_vm1, %v1500_v5 }
 0x4fa   : > { %v1694_v54 = vpop.f32.mrb[8].mxu1 }
 0x4fb   : > { %v1283_v55 = vpop.f32.mrb[9].mxu1 }
 0x4fc   : > { %v559_v56 = vpop.f32.mrb[10].mxu1 }
 0x4fd   : > { %v1284_v57 = vpop.f32.mrb[11].mxu1 }
 0x502   : > { %v606_v58 = vpop.f32.mrb[12].mxu1 }
 0x503   : > { %v1289_v59 = vpop.f32.mrb[13].mxu1  ;;  %v612_v60 = vsel %vm454_vm2, %v606_v58, -inf }
 0x504   : > { %613 = vmax.xlane.f32.xlu0 %v612_v60  ;;  %v609_v61 = vpop.f32.mrb[14].mxu1 }
 0x505   : > { %v1290_v62 = vpop.f32.mrb[15].mxu1 }
 0x50a   : > { %v716_v63 = vpop.f32.mrb[16].mxu1 }
 0x50b   : > { %v1301_v1 = vpop.f32.mrb[17].mxu1  ;;  %v722_v2 = vsel %vm454_vm2, %v716_v63, -inf }
 0x50c   : > { %723 = vmax.xlane.f32.xlu1 %v722_v2  ;;  %v719_v3 = vpop.f32.mrb[18].mxu1 }
 0x50d   : > { %v1302_v4 = vpop.f32.mrb[19].mxu1 }
 0x50e   : > { %v1408_v4 = vld [vmem:[%s1839_s8] sm:$0xff]  }
 0x512   : > { %v826_v6 = vpop.f32.mrb[20].mxu1 }
 0x513   : > { %v1313_v7 = vpop.f32.mrb[21].mxu1  ;;  %v832_v8 = vsel %vm454_vm2, %v826_v6, -inf }
 0x514   : > { %833 = vmax.xlane.f32.xlu0 %v832_v8  ;;  %v829_v9 = vpop.f32.mrb[22].mxu1  ;;  %v1410_v7 = vld [vmem:[%s1839_s8 + $0x10] sm:$0xff]   ;;  %v1411_v8 = vld [vmem:[%s1839_s8 + $0x18] sm:$0xff]  }
 0x515   : > { %v1314_v10 = vpop.f32.mrb[23].mxu1  ;;  %v1412_v9 = vld [vmem:[%s1839_s8 + $0x20] sm:$0xff]  }
 0x516   : > { %v1413_v10 = vld [vmem:[%s1839_s8 + $0x28] sm:$0xff]  }
 0x51d   : > { %734 = vrot.lane.b32.xlu1 %v1656_v23, %s1510_s21  ;;  %s1200_s21 = sshll.u32 %s348_s20, 3 }
 0x591   : > { %v614_v11 = vpop.xlane.xlu0 %613 }
 0x592   : > { %v615_v12 = vsub.f32 %v606_v58, %v614_v11 }
 0x594   : > { %v616_v13 = vmul.f32 1.442695, %v615_v12 }
 0x596   : > { %1422 = vpow2.f32 %v616_v13 }
 0x599   : > { %v724_v14 = vpop.xlane.xlu1 %723 }
 0x59a   : > { %v725_v15 = vsub.f32 %v716_v63, %v724_v14 }
 0x59c   : > { %v726_v16 = vmul.f32 1.442695, %v725_v15 }
 0x59d   : > { %v735_v30 = vpop.permute.xlu1 %734 }
 0x59e   : > { %1424 = vpow2.f32 %v726_v16  ;;  %v740_v36 = vsel %vm518_vm3, %v735_v30, 0 }
 0x5a0   : > { %v1423_v17 = vpop.eup %1422 }
 0x5a1   : > { %v834_v18 = vpop.xlane.xlu0 %833  ;;  %v618_v19 = vsel %vm454_vm2, %v1423_v17, 0.0 }
 0x5a2   : > { %v835_v20 = vsub.f32 %v826_v6, %v834_v18  ;;  %619 = vadd.xlane.f32.xlu0 %v618_v19  ;;  %v1409_v6 = vld [vmem:[%s1839_s8 + $0x8] sm:$0xff]  }
 0x5a4   : > { %v836_v21 = vmul.f32 1.442695, %v835_v20  ;;  %v1215_v20 = vld [vmem:[%s1835_s4] ss:$0 sm:$0xff] }
 0x5a6   : > { %1426 = vpow2.f32 %v836_v21 }
 0x5a8   : > { %v1425_v22 = vpop.eup %1424 }
 0x5a9   : > { %v728_v24 = vsel %vm454_vm2, %v1425_v22, 0.0 }
 0x5aa   : > { %729 = vadd.xlane.f32.xlu0 %v728_v24 }
 0x5b0   : > { %v1427_v25 = vpop.eup %1426 }
 0x5b1   : > { %v838_v26 = vsel %vm454_vm2, %v1427_v25, 0.0 }
 0x5b2   : > { %839 = vadd.xlane.f32.xlu1 %v838_v26 }
 0x5c0   : > { %624 = vrot.lane.b32.xlu0 %v1656_v23, %s1511_s25 }
 0x5c3   : > { %844 = vrot.lane.b32.xlu1 %v1656_v23, %s1512_s26 }
 0x62f   : > { %v620_v27 = vpop.xlane.xlu0 %619 }
 0x630   : > { %1428 = vrcp.f32 %v620_v27  ;;  %v1414_v27 = vld [vmem:[%s1839_s8 + $0x30] sm:$0xff]  }
 0x637   : > { %v730_v28 = vpop.xlane.xlu0 %729 }
 0x638   : > { %1430 = vrcp.f32 %v730_v28  ;;  %v1415_v28 = vld [vmem:[%s1839_s8 + $0x38] sm:$0xff]  }
 0x63a   : > { %v1429_v29 = vpop.eup %1428 }
 0x63b   : > { %v625_v31 = vpop.permute.xlu0 %624  ;;  %v622_v32 = vmul.f32 %v1429_v29, %v1423_v17  ;;  %v1217_v29 = vld [vmem:[%s1838_s7] ss:$0 sm:$0xff] }
 0x63c   : > { %v630_v33 = vsel %vm518_vm3, %v625_v31, 0 }
 0x63d   : > { %1292 = vmatpush3.bf16.msra.mxu0 %v630_v33  ;;  %v623_v34 = vpack.c.bf16 %v622_v32, %v622_v32 }
 0x63e   : > { %1303 = vmatprep.subr.bf16.mxu0 %v1500_v5 }
 0x63f   : > { %v840_v35 = vpop.xlane.xlu1 %839 }
 0x640   : > { %1432 = vrcp.f32 %v840_v35  ;;  %1294 = vmatmul.mubr.msk.bf16.vlgmr.msra.gmra.mrb[0].mxu0 %vm454_vm2, %v623_v34 }
 0x641   : > { %1304 = vmatpush3.bf16.msra.mxu0 %v740_v36  ;;  %1305 = vmatprep.mubr.msk.bf16.mxu0 %vm1501_vm1, %v1500_v5 }
 0x642   : > { %v1431_v23 = vpop.eup %1430  ;;  %1315 = vmatprep.subr.bf16.mxu0 %v1500_v5 }
 0x643   : > { %v732_v37 = vmul.f32 %v1431_v23, %v1425_v22  ;;  %v845_v38 = vpop.permute.xlu1 %844  ;;  %v1216_v22 = vld [vmem:[%s1836_s5] ss:$0 sm:$0xff] }
 0x644   : > { %v850_v40 = vsel %vm518_vm3, %v845_v38, 0 }
 0x645   : > { %v733_v39 = vpack.c.bf16 %v732_v37, %v732_v37 }
 0x648   : > { %1306 = vmatmul.mubr.msk.bf16.vlgmr.msra.gmra.mrb[4].mxu0 %vm454_vm2, %v733_v39 }
 0x649   : > { %1316 = vmatpush3.bf16.msra.mxu0 %v850_v40  ;;  %1317 = vmatprep.mubr.msk.bf16.mxu0 %vm1501_vm1, %v1500_v5 }
 0x64a   : > { %v1433_v41 = vpop.eup %1432  ;;  %1329 = vmatprep.subr.bf16.mxu0 %v1500_v5 }
 0x64b   : > { %v842_v42 = vmul.f32 %v1433_v41, %v1427_v25 }
 0x64d   : > { %v843_v43 = vpack.c.bf16 %v842_v42, %v842_v42 }
 0x650   : > { %1318 = vmatmul.mubr.msk.bf16.vlgmr.msra.gmra.mrb[8].mxu0 %vm454_vm2, %v843_v43 }
 0x651   : > { %1345 = vmatprep.mubr.msk.bf16.mxu0 %vm1501_vm1, %v1500_v5  ;;  %1330 = vmatpush3.bf16.msra.mxu0 %v1408_v4 }
 0x652   : > { %1331 = vmatprep.subr.bf16.mxu0 %v1500_v5 }
 0x655   : > { %1332 = vmatpush3.bf16.msra.mxu0 %v1409_v6 }
 0x656   : > { %1333 = vmatprep.subr.bf16.mxu0 %v1500_v5 }
 0x659   : > { %1334 = vmatpush3.bf16.msra.mxu0 %v1410_v7 }
 0x65a   : > { %1335 = vmatprep.subr.bf16.mxu0 %v1500_v5 }
 0x65d   : > { %1336 = vmatpush3.bf16.msra.mxu0 %v1411_v8 }
 0x65e   : > { %1337 = vmatprep.subr.bf16.mxu0 %v1500_v5 }
 0x661   : > { %1338 = vmatpush3.bf16.msra.mxu0 %v1412_v9 }
 0x662   : > { %1339 = vmatprep.subr.bf16.mxu0 %v1500_v5 }
 0x665   : > { %1340 = vmatpush3.bf16.msra.mxu0 %v1413_v10 }
 0x666   : > { %1341 = vmatprep.subr.bf16.mxu0 %v1500_v5 }
 0x669   : > { %1342 = vmatpush3.bf16.msra.mxu0 %v1414_v27 }
 0x66a   : > { %1343 = vmatprep.subr.bf16.mxu0 %v1500_v5 }
 0x66d   : > { %1344 = vmatpush3.bf16.msra.mxu0 %v1415_v28 }
 0x713   : > { %v666_v44 = vpop.f32.mrb[0].mxu0 }
 0x714   : > { %893 = vrot.lane.b32.xlu1 %v666_v44, %s1513_s27  ;;  %v1295_v45 = vpop.f32.mrb[1].mxu0  ;;  %s1231_s27 = sshll.u32 %s1593_s17, 7  ;;  %s1124_s17 = scalar_lea.sflag [#allocation3], %s348_s20 }
 0x715   : > { %v669_v46 = vpop.f32.mrb[2].mxu0  ;;  %s1788_s12 = scalar_lea.hbm %s1841_s10, %s1231_s27 }
 0x716   : > { %v1296_v47 = vpop.f32.mrb[3].mxu0 }
 0x71b   : > { %v776_v48 = vpop.f32.mrb[4].mxu0 }
 0x71c   : > { %897 = vrot.lane.b32.xlu0 %v776_v48, %s1514_s28  ;;  %v1307_v49 = vpop.f32.mrb[5].mxu0  ;;  %s350_s28 = scalar_lea.vmem [#allocation2], %s1200_s21  ;;  %s1516_s21 = smov [#allocation2]  }
 0x71d   : > { %v779_v50 = vpop.f32.mrb[6].mxu0  ;;  %s1440_s25 = sshll.u32 %s1516_s21, 4  ;;  %s1441_s25 = int_to_ptr.vmem [resolvable:$false] %s1440_s25 }
 0x71e   : > { %v1308_v51 = vpop.f32.mrb[7].mxu0  ;;  %s1442_s26 = scalar_lea.vmem %s1441_s25, 256 }
 0x723   : > { %v886_v52 = vpop.f32.mrb[8].mxu0 }
 0x724   : > { %901 = vrot.lane.b32.xlu1 %v886_v52, %s1515_s29  ;;  %v1319_v53 = vpop.f32.mrb[9].mxu0  ;;  %s1137_s29 = sshll.u32 %s350_s28, 4  ;;  %s1790_s29 = int_to_ptr.vmem [resolvable:$true] %s1137_s29 }
 0x725   : > { %v889_v55 = vpop.f32.mrb[10].mxu0  ;;  %s1436_s18 = scalar_lea.vmem %s1790_s29, 128  ;;  %p1443_p0 = scmp.lt.s32.totalorder %s1790_s29, %s1441_s25 }
 0x726   : > { %v1320_v56 = vpop.f32.mrb[11].mxu0  ;;  %p1437_p11 = scmp.ne.s32.totalorder %s1790_s29, %s1436_s18  ;;  %p1444_p1 = scmp.lt.s32.totalorder %s1442_s26, %s1436_s18 }
 0x728   : > { %p1438_p12 = pnand %p1437_p11, %p1610_p5  ;;  %p1445_p2 = por %p1444_p1, %p1443_p0 }
 0x72a   : > { %p1439_p13 = pneg %p1438_p12 }
 0x72c   : > { %p1446_p3 = pnand %p1445_p2, %p1439_p13 }
 0x786   : > { %v894_v57 = vpop.permute.xlu1 %893 }
 0x787   : > { %v904_v59 = vsel %vm454_vm2, %v1694_v54, %v894_v57  ;;  %v1406_v54 = vld [vmem:[%s1837_s6] sm:$0xff]  }
 0x788   : > { %1322 = vmatpush3.bf16.msra.mxu1 %v1406_v54 }
 0x789   : > { %1323 = vmatprep.subr.bf16.mxu1 %v1500_v5  ;;  %v1221_v5 = vld [vmem:[%s1840_s9] ss:$0 sm:$0xff] }
 0x78e   : > { %v898_v58 = vpop.permute.xlu0 %897 }
 0x78f   : > { %v906_v60 = vsel %vm905_vm4, %v904_v59, %v898_v58 }
 0x796   : > { %v902_v61 = vpop.permute.xlu1 %901 }
 0x797   : > { %v908_v62 = vsel %vm907_vm5, %v906_v60, %v902_v61 }
 0x798   : > { %v1723_v63 = vadd.f32 %v908_v62, %v1625_v0  ;;  %v1407_v0 = vld [vmem:[%s1837_s6 + $0x8] sm:$0xff]  }
 0x799   : > { %1324 = vmatpush3.bf16.msra.mxu1 %v1407_v0 }
 0x79a   : > { %v912_v1 = vsel %vm359_vm0, %v1723_v63, 0.0  ;;  %v916_v2 = vmul.f32 %v1723_v63, %v1723_v63 }
 0x79b   : > { %913 = vadd.xlane.f32.xlu0 %v912_v1 }
 0x79c   : > { %v917_v3 = vsel %vm359_vm0, %v916_v2, 0.0 }
 0x79d   : > { %918 = vadd.xlane.f32.xlu1 %v917_v3 }
 0x828   : > { %v914_v11 = vpop.xlane.xlu0 %913 }
 0x829   : > { %v915_v12 = vmul.f32 0.03125, %v914_v11 }
 0x82a   : > { %v919_v13 = vpop.xlane.xlu1 %918 }
 0x82b   : > { %v921_v14 = vmul.f32 %v915_v12, %v915_v12  ;;  %v920_v15 = vmul.f32 0.03125, %v919_v13  ;;  %v925_v18 = vsub.f32 %v1723_v63, %v915_v12 }
 0x82d   : > { %v922_v16 = vsub.f32 %v920_v15, %v921_v14 }
 0x82f   : > { %v923_v17 = vadd.f32 1e-05, %v922_v16 }
 0x831   : > { %1434 = vrsqrt.f32 %v923_v17 }
 0x83b   : > { %v1435_v19 = vpop.eup %1434 }
 0x83c   : > { %v926_v21 = vmul.f32 %v1435_v19, %v925_v18 }
 0x83e   : > { %v933_v24 = vmul.f32 %v1215_v20, %v926_v21 }
 0x840   : > { %v940_v25 = vadd.f32 %v1216_v22, %v933_v24 }
 0x842   : > { %v941_v26 = vpack.c.bf16 %v940_v25, %v940_v25 }
 0x844   : > { %1326 = vmatmul.mubr.msk.bf16.vlgmr.msra.gmra.mrb[24].mxu1 %vm359_vm0, %v941_v26 }
 0x917   : > { %v1002_v30 = vpop.f32.mrb[24].mxu1 }
 0x918   : > { %v1003_v31 = vadd.f32 %v1217_v29, %v1002_v30  ;;  %v1327_v32 = vpop.f32.mrb[25].mxu1 }
 0x919   : > { %v1005_v33 = vpop.f32.mrb[26].mxu1 }
 0x91a   : > { %v1008_v34 = vmax.f32 %v1003_v31, 0.0  ;;  %v1328_v35 = vpop.f32.mrb[27].mxu1 }
 0x91c   : > { %v1009_v36 = vpack.c.bf16 %v1008_v34, %v1008_v34 }
 0x91e   : > { %1346 = vmatmul.mubr.bf16.vlgmr.msra.gmra.mrb[12].mxu0 %v1009_v36 }
 0x9f1   : > { %v1115_v23 = vpop.f32.mrb[12].mxu0 }
 0x9f2   : > { %v1116_v37 = vadd.f32 %v1221_v5, %v1115_v23  ;;  %v1347_v38 = vpop.f32.mrb[13].mxu0 }
 0x9f3   : > { %v1118_v39 = vpop.f32.mrb[14].mxu0 }
 0x9f4   : > { %v1121_v40 = vadd.f32 %v1116_v37, %v1723_v63  ;;  %v1348_v41 = vpop.f32.mrb[15].mxu0 }
 0x9f6   : > { %1122 = vst.msk [vmem:[%s350_s28] sm:$0xff] %vm359_vm0, %v1121_v40 }
 0x9f7   : > { %1449 = shalt.err (!%p1446_p3)
}
 0x9f8   : > { %s1450_s20 = scalar_lea.hbm %s1788_s12, 128  ;;  %s1454_s30 = scalar_lea.hbm %s1841_s10, 256 }
 0x9f9   : > { %p1451_p4 = scmp.ne.s32.totalorder %s1788_s12, %s1450_s20  ;;  %p1455_p9 = scmp.lt.u32.totalorder %s1788_s12, %s1841_s10 }
 0x9fa   : > { %p1456_p10 = scmp.lt.u32.totalorder %s1454_s30, %s1450_s20  ;;  %p1458_p12 = scmp.lt.u32.totalorder %s1450_s20, %s1788_s12 }
 0x9fb   : > { %p1452_p7 = pnand %p1451_p4, %p1610_p5 }
 0x9fc   : > { %p1457_p11 = por %p1456_p10, %p1455_p9 }
 0x9fd   : > { %p1453_p8 = pneg %p1452_p7 }
 0x9fe   : > { %p1459_p13 = por %p1458_p12, %p1457_p11 }
 0xa00   : > { %p1460_p0 = pnand %p1459_p13, %p1453_p8 }
 0xa02   : > { %1463 = shalt.err (!%p1460_p0)
}
 0xa03   : > { %1349 = dma.vmem_to_hbm [thread:$0]  (%p1610_p5), %s1790_s29, 128, %s1788_s12, %s1124_s17  }
 0xa04 PF: > { %p1355_p1 = scmp.ge.s32.totalorder %s1498_s16, 2  ;;  %s1149_s18 = sand.u32 1, %s1486_s13  }
 0xa05   : > { %s1150_s25 = scalar_lea.sflag [#allocation3], %s1149_s18 }
 0xa06   : > { %p1352_p2 = pnand %p1355_p1, %p1614_p6 }
 0xa08   : > { %1481 = dma.done.wait (!%p1352_p2), %s1150_s25, 128  }
 0xa09   : > { %1483 = vsyncadd (!%p1352_p2), %s1150_s25, 4294967168  ;;  %p20_p3 = scmp.ge.s32.totalorder %s1597_s19, 4   ;;  %s1844_s13 = smov %s1490_s14 }
 0xa0a   : > { %s1845_s14 = smov %s1494_s15  ;;  %s1846_s15 = smov %s1608_s22 }
 0xa0b   : > { %s1847_s16 = smov %s1597_s19  ;;  %22 = sbr.rel (!%p20_p3) target bundleno = 3 (0x3), region = 95 }
 0xa12   :  { %1155 = vsyncpa [#allocation3], 1 }
 0xa13   :  { %1157 = vsyncpa [#allocation3 + $0x1], 1 }

</bundles_post_ra>
